<compile_context>
chip_gen: v7x
topology: tpu7x:2x2x1
jax: 0.10.0
libtpu: 0.0.40
codegen_flags: <defaults>
</compile_context>

<pallas_src>
import jax
import jax.numpy as jnp
from jax.experimental import pallas as pl
from jax.experimental.pallas import tpu as pltpu

BN_EPS = 1e-5


def conv_stats_kernel(xp_ref, w_ref, y_ref, stats_ref, slab_ref):
    # xp_ref   : (Hp, Wp, Cin)       padded input for one image (f32)
    # w_ref    : (KH*KW*Cin, Coutp)  folded conv weight (bf16, Cout zero-padded)
    # y_ref    : (H, W, Coutp)       conv output (f32)
    # stats_ref: (2, Coutp)          per-image [sum, sum-of-squares] (f32)
    # slab_ref : (H*W, KH*KW*Cin)    im2col scratch (f32, cast to bf16 at the dot)
    Hp, Wp, Cin = xp_ref.shape
    H, W, Coutp = y_ref.shape
    KH = Hp - H + 1
    KW = Wp - W + 1
    rows = H * W

    x = xp_ref[...]  # (Hp, Wp, Cin)

    # Build the im2col slab once per tile: column block t holds the shifted
    # patch for tap t = kh*KW + kw.  Static slices / static lane offsets only.
    t = 0
    for kh in range(KH):
        for kw in range(KW):
            patch = x[kh:kh + H, kw:kw + W, :].reshape(rows, Cin)
            slab_ref[:, t * Cin:(t + 1) * Cin] = patch
            t += 1

    # Single MXU contraction over K = KH*KW*Cin, bf16 operands, f32 accumulate.
    y = jnp.dot(slab_ref[...].astype(jnp.bfloat16), w_ref[...],
                preferred_element_type=jnp.float32)          # (rows, Coutp) f32

    # Per-image partial BatchNorm statistics (kept in f32).
    stats_ref[0:1, :] = jnp.sum(y, axis=0, keepdims=True)
    stats_ref[1:2, :] = jnp.sum(y * y, axis=0, keepdims=True)

    y_ref[...] = y.reshape(H, W, Coutp)


def bn_apply_kernel(y_ref, scale_ref, bias_ref, o_ref):
    # y_ref: (H, W, Coutp) f32, scale/bias: (1, Coutp) f32, o_ref: (H, W, Coutp)
    H, W, Coutp = o_ref.shape
    y = y_ref[...].reshape(H * W, Coutp)
    o = y * scale_ref[...] + bias_ref[...]
    o_ref[...] = o.reshape(H, W, Coutp).astype(o_ref.dtype)


def conv_bn_2d(x_nchw, weight_oihw, gamma, beta, eps=BN_EPS):
    """x_nchw: (N, Cin, H, W), weight_oihw: (Cout, Cin, KH, KW). Returns NCHW."""
    N, Cin, H, W = x_nchw.shape
    Cout, _, KH, KW = weight_oihw.shape
    ph, pw = (KH - 1) // 2, (KW - 1) // 2          # padding=(1, 1) for 3x3
    Hp, Wp = H + 2 * ph, W + 2 * pw
    K = KH * KW * Cin
    Coutp = ((Cout + 127) // 128) * 128            # lane-dense output channels
    rows_total = N * H * W

    # TODO(synk): keep the surrounding model NHWC end-to-end to avoid these
    # NCHW<->NHWC HBM passes; they are kept here for PyTorch API parity.
    x_nhwc = jnp.transpose(x_nchw, (0, 2, 3, 1))
    x_pad = jnp.pad(x_nhwc, ((0, 0), (ph, ph), (pw, pw), (0, 0)))

    # OIHW -> (KH*KW*Cin, Coutp) folded weight, zero-padded channels, bf16.
    w = jnp.transpose(weight_oihw, (2, 3, 1, 0)).reshape(K, Cout)
    w = jnp.pad(w, ((0, 0), (0, Coutp - Cout))).astype(jnp.bfloat16)

    cparams = pltpu.CompilerParams(
        dimension_semantics=("parallel",),
        vmem_limit_bytes=32 * 1024 * 1024,
    )

    # ---- Pass 1: conv + per-image partial BN statistics --------------------
    y, stats = pl.pallas_call(
        conv_stats_kernel,
        grid=(N,),
        in_specs=[
            pl.BlockSpec((None, Hp, Wp, Cin), lambda n: (n, 0, 0, 0)),
            pl.BlockSpec((K, Coutp), lambda n: (0, 0)),
        ],
        out_specs=(
            pl.BlockSpec((None, H, W, Coutp), lambda n: (n, 0, 0, 0)),
            pl.BlockSpec((None, 2, Coutp), lambda n: (n, 0, 0)),
        ),
        out_shape=(
            jax.ShapeDtypeStruct((N, H, W, Coutp), jnp.float32),
            jax.ShapeDtypeStruct((N, 2, Coutp), jnp.float32),
        ),
        scratch_shapes=[pltpu.VMEM((H * W, K), jnp.float32)],
        compiler_params=cparams,
    )(x_pad, w)

    # ---- Tiny cross-image stats reduction + scale/bias fold (f32, in XLA) ---
    tot = jnp.sum(stats, axis=0)                             # (2, Coutp)
    cnt = jnp.float32(rows_total)
    mean = tot[0] / cnt
    var = jnp.maximum(tot[1] / cnt - mean * mean, 0.0)       # biased variance
    inv = jax.lax.rsqrt(var + eps)
    gamma_p = jnp.zeros((Coutp,), jnp.float32).at[:Cout].set(gamma.astype(jnp.float32))
    beta_p = jnp.zeros((Coutp,), jnp.float32).at[:Cout].set(beta.astype(jnp.float32))
    scale = (gamma_p * inv).reshape(1, Coutp)
    bias = (beta_p - mean * gamma_p * inv).reshape(1, Coutp)

    # ---- Pass 2: memory-bound normalize ------------------------------------
    o = pl.pallas_call(
        bn_apply_kernel,
        grid=(N,),
        in_specs=[
            pl.BlockSpec((None, H, W, Coutp), lambda n: (n, 0, 0, 0)),
            pl.BlockSpec((1, Coutp), lambda n: (0, 0)),
            pl.BlockSpec((1, Coutp), lambda n: (0, 0)),
        ],
        out_specs=pl.BlockSpec((None, H, W, Coutp), lambda n: (n, 0, 0, 0)),
        out_shape=jax.ShapeDtypeStruct((N, H, W, Coutp), jnp.float32),
        compiler_params=cparams,
    )(y, scale, bias)

    out = o[..., :Cout]
    return jnp.transpose(out, (0, 3, 1, 2)).astype(x_nchw.dtype)


def reference(x_nchw, weight_oihw, gamma, beta):
    # Reference with the same matmul precision as the kernel (bf16 operands,
    # f32 accumulation); BatchNorm math in f32 (training-mode batch stats).
    y = jax.lax.conv_general_dilated(
        x_nchw.astype(jnp.bfloat16), weight_oihw.astype(jnp.bfloat16),
        window_strides=(1, 1), padding=[(1, 1), (1, 1)],
        dimension_numbers=('NCHW', 'OIHW', 'NCHW'),
        preferred_element_type=jnp.float32)
    mean = jnp.mean(y, axis=(0, 2, 3), keepdims=True)
    var = jnp.mean((y - mean) ** 2, axis=(0, 2, 3), keepdims=True)
    yn = (y - mean) * jax.lax.rsqrt(var + BN_EPS)
    return yn * gamma.reshape(1, -1, 1, 1) + beta.reshape(1, -1, 1, 1)


if __name__ == "__main__":
    key = jax.random.PRNGKey(0)
    kx, kw = jax.random.split(key)

    N, Cin, Cout, H, W = 2, 4, 8, 16, 16
    x = jax.random.normal(kx, (N, Cin, H, W), dtype=jnp.float32)

    # Deterministic parameter init (shapes from ConvBn2d.__init__):
    #   conv.weight: (Cout, Cin, 3, 3) (bias=False)
    #   bn.weight (gamma): ones(Cout), bn.bias (beta): zeros(Cout)
    fan_in = Cin * 3 * 3
    weight = jax.random.normal(kw, (Cout, Cin, 3, 3), dtype=jnp.float32) \
             * (2.0 / fan_in) ** 0.5
    gamma = jnp.ones((Cout,), jnp.float32)
    beta = jnp.zeros((Cout,), jnp.float32)

    out = jax.block_until_ready(conv_bn_2d(x, weight, gamma, beta))
    ref = jax.block_until_ready(reference(x, weight, gamma, beta))

    assert out.shape == (N, Cout, H, W)
    max_err = float(jnp.max(jnp.abs(out - ref)))
    assert jnp.allclose(out, ref, atol=1e-3, rtol=1e-3), max_err

    print("KERNEL_OK")
</pallas_src>

<mosaic_0001>
module attributes {stable_mosaic.version = 11 : i64} {
  func.func @conv_stats_kernel(%arg0: i32, %arg1: memref<1x18x18x4xf32, #tpu.memory_space<vmem>>, %arg2: memref<36x128xbf16, #tpu.memory_space<vmem>>, %arg3: memref<1x16x16x128xf32, #tpu.memory_space<vmem>>, %arg4: memref<1x2x128xf32, #tpu.memory_space<vmem>>, %arg5: memref<256x36xf32, #tpu.memory_space<vmem>>) attributes {dimension_semantics = [#tpu.dimension_semantics<parallel>], iteration_bounds = array<i64: 2>, scalar_prefetch = 0 : i64, scratch_operands = 1 : i64, tpu.core_type = #tpu.core_type<tc>, window_params = [{transform_indices = @transform_0, window_bounds = array<i64: 1, 18, 18, 4>}, {pipeline_mode = #tpu.pipeline_mode<synchronous>, transform_indices = @transform_1, window_bounds = array<i64: 36, 128>}, {transform_indices = @transform_2, window_bounds = array<i64: 1, 16, 16, 128>}, {transform_indices = @transform_3, window_bounds = array<i64: 1, 2, 128>}]} {
    %c0 = arith.constant 0 : index
    %c0_0 = arith.constant 0 : index
    %c0_1 = arith.constant 0 : index
    %c0_2 = arith.constant 0 : index
    %0 = vector.load %arg1[%c0, %c0_0, %c0_1, %c0_2] : memref<1x18x18x4xf32, #tpu.memory_space<vmem>>, vector<1x18x18x4xf32>
    %1 = vector.shape_cast %0 : vector<1x18x18x4xf32> to vector<18x18x4xf32>
    %2 = vector.extract_strided_slice %1 {offsets = [0, 0, 0], sizes = [16, 16, 4], strides = [1, 1, 1]} : vector<18x18x4xf32> to vector<16x16x4xf32>
    %3 = vector.shape_cast %2 : vector<16x16x4xf32> to vector<256x4xf32>
    %c0_3 = arith.constant 0 : index
    %c0_4 = arith.constant 0 : index
    %4 = vector.load %arg5[%c0_3, %c0_4] : memref<256x36xf32, #tpu.memory_space<vmem>>, vector<256x4xf32>
    tpu.vector_store %arg5[%c0_3, %c0_4], %3 {strides = array<i32>} : memref<256x36xf32, #tpu.memory_space<vmem>>, vector<256x4xf32>,
    %5 = vector.extract_strided_slice %1 {offsets = [0, 1, 0], sizes = [16, 16, 4], strides = [1, 1, 1]} : vector<18x18x4xf32> to vector<16x16x4xf32>
    %6 = vector.shape_cast %5 : vector<16x16x4xf32> to vector<256x4xf32>
    %c0_5 = arith.constant 0 : index
    %c4 = arith.constant 4 : index
    %7 = vector.load %arg5[%c0_5, %c4] : memref<256x36xf32, #tpu.memory_space<vmem>>, vector<256x4xf32>
    tpu.vector_store %arg5[%c0_5, %c4], %6 {strides = array<i32>} : memref<256x36xf32, #tpu.memory_space<vmem>>, vector<256x4xf32>,
    %8 = vector.extract_strided_slice %1 {offsets = [0, 2, 0], sizes = [16, 16, 4], strides = [1, 1, 1]} : vector<18x18x4xf32> to vector<16x16x4xf32>
    %9 = vector.shape_cast %8 : vector<16x16x4xf32> to vector<256x4xf32>
    %c0_6 = arith.constant 0 : index
    %c8 = arith.constant 8 : index
    %10 = vector.load %arg5[%c0_6, %c8] : memref<256x36xf32, #tpu.memory_space<vmem>>, vector<256x4xf32>
    tpu.vector_store %arg5[%c0_6, %c8], %9 {strides = array<i32>} : memref<256x36xf32, #tpu.memory_space<vmem>>, vector<256x4xf32>,
    %11 = vector.extract_strided_slice %1 {offsets = [1, 0, 0], sizes = [16, 16, 4], strides = [1, 1, 1]} : vector<18x18x4xf32> to vector<16x16x4xf32>
    %12 = vector.shape_cast %11 : vector<16x16x4xf32> to vector<256x4xf32>
    %c0_7 = arith.constant 0 : index
    %c12 = arith.constant 12 : index
    %13 = vector.load %arg5[%c0_7, %c12] : memref<256x36xf32, #tpu.memory_space<vmem>>, vector<256x4xf32>
    tpu.vector_store %arg5[%c0_7, %c12], %12 {strides = array<i32>} : memref<256x36xf32, #tpu.memory_space<vmem>>, vector<256x4xf32>,
    %14 = vector.extract_strided_slice %1 {offsets = [1, 1, 0], sizes = [16, 16, 4], strides = [1, 1, 1]} : vector<18x18x4xf32> to vector<16x16x4xf32>
    %15 = vector.shape_cast %14 : vector<16x16x4xf32> to vector<256x4xf32>
    %c0_8 = arith.constant 0 : index
    %c16 = arith.constant 16 : index
    %16 = vector.load %arg5[%c0_8, %c16] : memref<256x36xf32, #tpu.memory_space<vmem>>, vector<256x4xf32>
    tpu.vector_store %arg5[%c0_8, %c16], %15 {strides = array<i32>} : memref<256x36xf32, #tpu.memory_space<vmem>>, vector<256x4xf32>,
    %17 = vector.extract_strided_slice %1 {offsets = [1, 2, 0], sizes = [16, 16, 4], strides = [1, 1, 1]} : vector<18x18x4xf32> to vector<16x16x4xf32>
    %18 = vector.shape_cast %17 : vector<16x16x4xf32> to vector<256x4xf32>
    %c0_9 = arith.constant 0 : index
    %c20 = arith.constant 20 : index
    %19 = vector.load %arg5[%c0_9, %c20] : memref<256x36xf32, #tpu.memory_space<vmem>>, vector<256x4xf32>
    tpu.vector_store %arg5[%c0_9, %c20], %18 {strides = array<i32>} : memref<256x36xf32, #tpu.memory_space<vmem>>, vector<256x4xf32>,
    %20 = vector.extract_strided_slice %1 {offsets = [2, 0, 0], sizes = [16, 16, 4], strides = [1, 1, 1]} : vector<18x18x4xf32> to vector<16x16x4xf32>
    %21 = vector.shape_cast %20 : vector<16x16x4xf32> to vector<256x4xf32>
    %c0_10 = arith.constant 0 : index
    %c24 = arith.constant 24 : index
    %22 = vector.load %arg5[%c0_10, %c24] : memref<256x36xf32, #tpu.memory_space<vmem>>, vector<256x4xf32>
    tpu.vector_store %arg5[%c0_10, %c24], %21 {strides = array<i32>} : memref<256x36xf32, #tpu.memory_space<vmem>>, vector<256x4xf32>,
    %23 = vector.extract_strided_slice %1 {offsets = [2, 1, 0], sizes = [16, 16, 4], strides = [1, 1, 1]} : vector<18x18x4xf32> to vector<16x16x4xf32>
    %24 = vector.shape_cast %23 : vector<16x16x4xf32> to vector<256x4xf32>
    %c0_11 = arith.constant 0 : index
    %c28 = arith.constant 28 : index
    %25 = vector.load %arg5[%c0_11, %c28] : memref<256x36xf32, #tpu.memory_space<vmem>>, vector<256x4xf32>
    tpu.vector_store %arg5[%c0_11, %c28], %24 {strides = array<i32>} : memref<256x36xf32, #tpu.memory_space<vmem>>, vector<256x4xf32>,
    %26 = vector.extract_strided_slice %1 {offsets = [2, 2, 0], sizes = [16, 16, 4], strides = [1, 1, 1]} : vector<18x18x4xf32> to vector<16x16x4xf32>
    %27 = vector.shape_cast %26 : vector<16x16x4xf32> to vector<256x4xf32>
    %c0_12 = arith.constant 0 : index
    %c32 = arith.constant 32 : index
    %28 = vector.load %arg5[%c0_12, %c32] : memref<256x36xf32, #tpu.memory_space<vmem>>, vector<256x4xf32>
    tpu.vector_store %arg5[%c0_12, %c32], %27 {strides = array<i32>} : memref<256x36xf32, #tpu.memory_space<vmem>>, vector<256x4xf32>,
    %c0_13 = arith.constant 0 : index
    %c0_14 = arith.constant 0 : index
    %29 = vector.load %arg5[%c0_13, %c0_14] : memref<256x36xf32, #tpu.memory_space<vmem>>, vector<256x36xf32>
    %30 = arith.truncf %29 : vector<256x36xf32> to vector<256x36xbf16>
    %c0_15 = arith.constant 0 : index
    %c0_16 = arith.constant 0 : index
    %31 = vector.load %arg2[%c0_15, %c0_16] : memref<36x128xbf16, #tpu.memory_space<vmem>>, vector<36x128xbf16>
    %cst = arith.constant dense<0.000000e+00> : vector<256x128xf32>
    %32 = tpu.matmul %30, %31, %cst {dimension_numbers = #tpu.dot_dimension_numbers<[1], [0], [0], [1], [0, 0, 1, 1], [], []>} : vector<256x36xbf16>, vector<36x128xbf16>, vector<256x128xf32> -> vector<256x128xf32>
    %cst_17 = arith.constant dense<0.000000e+00> : vector<128xf32>
    %33 = vector.multi_reduction <add>, %32, %cst_17 [0] : vector<256x128xf32> to vector<128xf32>
    %34 = vector.shape_cast %33 : vector<128xf32> to vector<1x128xf32>
    %c0_18 = arith.constant 0 : index
    %c0_19 = arith.constant 0 : index
    %c0_20 = arith.constant 0 : index
    %35 = vector.load %arg4[%c0_18, %c0_19, %c0_20] : memref<1x2x128xf32, #tpu.memory_space<vmem>>, vector<1x1x128xf32>
    %36 = vector.shape_cast %35 : vector<1x1x128xf32> to vector<1x128xf32>
    %37 = vector.shape_cast %34 : vector<1x128xf32> to vector<1x1x128xf32>
    tpu.vector_store %arg4[%c0_18, %c0_19, %c0_20], %37 {strides = array<i32>} : memref<1x2x128xf32, #tpu.memory_space<vmem>>, vector<1x1x128xf32>,
    %38 = arith.mulf %32, %32 : vector<256x128xf32>
    %cst_21 = arith.constant dense<0.000000e+00> : vector<128xf32>
    %39 = vector.multi_reduction <add>, %38, %cst_21 [0] : vector<256x128xf32> to vector<128xf32>
    %40 = vector.shape_cast %39 : vector<128xf32> to vector<1x128xf32>
    %c0_22 = arith.constant 0 : index
    %c1 = arith.constant 1 : index
    %c0_23 = arith.constant 0 : index
    %41 = vector.load %arg4[%c0_22, %c1, %c0_23] : memref<1x2x128xf32, #tpu.memory_space<vmem>>, vector<1x1x128xf32>
    %42 = vector.shape_cast %41 : vector<1x1x128xf32> to vector<1x128xf32>
    %43 = vector.shape_cast %40 : vector<1x128xf32> to vector<1x1x128xf32>
    tpu.vector_store %arg4[%c0_22, %c1, %c0_23], %43 {strides = array<i32>} : memref<1x2x128xf32, #tpu.memory_space<vmem>>, vector<1x1x128xf32>,
    %44 = vector.shape_cast %32 : vector<256x128xf32> to vector<16x16x128xf32>
    %c0_24 = arith.constant 0 : index
    %c0_25 = arith.constant 0 : index
    %c0_26 = arith.constant 0 : index
    %c0_27 = arith.constant 0 : index
    %45 = vector.load %arg3[%c0_24, %c0_25, %c0_26, %c0_27] : memref<1x16x16x128xf32, #tpu.memory_space<vmem>>, vector<1x16x16x128xf32>
    %46 = vector.shape_cast %45 : vector<1x16x16x128xf32> to vector<16x16x128xf32>
    %47 = vector.shape_cast %44 : vector<16x16x128xf32> to vector<1x16x16x128xf32>
    tpu.vector_store %arg3[%c0_24, %c0_25, %c0_26, %c0_27], %47 {strides = array<i32>} : memref<1x16x16x128xf32, #tpu.memory_space<vmem>>, vector<1x16x16x128xf32>,
    return
  }
  func.func @transform_0(%arg0: i32) -> (i32, i32, i32, i32) {
    %c0_i32 = arith.constant 0 : i32
    %c0_i32_0 = arith.constant 0 : i32
    %c0_i32_1 = arith.constant 0 : i32
    %c0_i32_2 = arith.constant 0 : i32
    return %arg0, %c0_i32, %c0_i32_0, %c0_i32_1 : i32, i32, i32, i32
  }
  func.func @transform_1(%arg0: i32) -> (i32, i32) {
    %c0_i32 = arith.constant 0 : i32
    %c0_i32_0 = arith.constant 0 : i32
    %c0_i32_1 = arith.constant 0 : i32
    return %c0_i32, %c0_i32_0 : i32, i32
  }
  func.func @transform_2(%arg0: i32) -> (i32, i32, i32, i32) {
    %c0_i32 = arith.constant 0 : i32
    %c0_i32_0 = arith.constant 0 : i32
    %c0_i32_1 = arith.constant 0 : i32
    %c0_i32_2 = arith.constant 0 : i32
    return %arg0, %c0_i32, %c0_i32_0, %c0_i32_1 : i32, i32, i32, i32
  }
  func.func @transform_3(%arg0: i32) -> (i32, i32, i32) {
    %c0_i32 = arith.constant 0 : i32
    %c0_i32_0 = arith.constant 0 : i32
    %c0_i32_1 = arith.constant 0 : i32
    return %arg0, %c0_i32, %c0_i32_0 : i32, i32, i32
  }
}

</mosaic_0001>

<bundles_post_ra>
// kernel: tpu_custom_call.1
= control target key start
LH: loop header
LB: loop body
LE: loop exit
PB: predicated region body
PF: predicated region fallthrough
CT: control target
= control target key end

     0   :  { %9 = vsyncpa [#allocation4], 0  ;;  %s3815_s0 = inlined_call_operand.vmem [shape: f32[2,18,18,4], index: 0, kind: input, shape index: {}]   ;;  %s3816_s1 = inlined_call_operand.vmem [shape: bf16[36,128], index: 1, kind: input, shape index: {}]   ;;  %s3817_s2 = inlined_call_operand.hbm [shape: f32[2,16,16,128], index: 2, kind: output, shape index: {0}]   ;;  %s3818_s3 = inlined_call_operand.hbm [shape: f32[2,2,128], index: 3, kind: output, shape index: {1}]  }
   0x1   :  { %11 = vsyncpa [#allocation4 + $0x1], 0 }
   0x2   :  { %12 = vsyncpa [#allocation6], 0 }
   0x3   :  { %14 = vsyncpa [#allocation6 + $0x1], 0  ;;  %s2367_s12 = smov 0   ;;  %s2369_s13 = smov 0  }
   0x4   :  { %s2371_s14 = smov 0   ;;  %s2373_s15 = smov 0  }
   0x5 LB: > { %s2388_s16 = sadd.s32 4294967295, %s2334_s15   ;;  %s2084_s17 = sadd.s32 4294967294, %s2334_s15   ;;  %s2334_s15 = sphi %s2373_s15, %s3956_s15   ;;  %s2330_s14 = sphi %s2371_s14, %s3955_s14   ;;  %s2326_s13 = sphi %s2369_s13, %s3954_s13   ;;  %s2322_s12 = sphi %s2367_s12, %s3953_s12  }
   0x6   : > { %s2392_s18 = sadd.s32 1, %s2334_s15   ;;  %s74_s19 = sadd.s32 1, %s2330_s14 }
   0x7   : > { %s71_s20 = ssub.s32 %s2334_s15, %s2392_s18  ;;  %p84_p0 = scmp.ne.s32.totalorder %s2330_s14, %s2326_s13 }
   0x8   : > { %p72_p1 = scmp.eq.s32.totalorder %s71_s20, 0  ;;  %p85_p2 = scmp.eq.s32.totalorder %s2388_s16, 1 }
   0x9   : > { %p90_p3 = scmp.ne.s32.totalorder %s2326_s13, %s2322_s12  ;;  %p91_p4 = scmp.eq.s32.totalorder %s2084_s17, 1 }
   0xa   : > { %s2403_s21 = scalar_select %p72_p1, %s2330_s14, %s74_s19  }
   0xb   : > { %p2405_p5 = por %p85_p2, %p84_p0  ;;  %p2409_p6 = por %p91_p4, %p90_p3 }
   0xc   : > { %p2087_p7 = scmp.ge.s32.totalorder %s2334_s15, 1  ;;  %p146_p8 = scmp.lt.s32.totalorder %s2334_s15, 3 }
   0xe   : > { %p147_p9 = pnand %p2087_p7, %p146_p8 }
  0x10   : > { %150 = sbr.rel (%p147_p9) target bundleno = 928 (0x3a0), region = 28 }
  0x17   : > { %p175_p10 = scmp.lt.s32.totalorder %s2388_s16, 1  ;;  %vm235_vm0 = vcmask 31744   ;;  %vm316_vm1 = vcmask 1046528   ;;  %s2336_s29 = smov 4   ;;  %vm526_vm2 = vcmask 1045504   ;;  %vm493_vm3 = vcmask 64544  }
  0x18   : > { %s2337_s30 = smov 8   ;;  %s2338_s4 = smov 12   ;;  %vm703_vm4 = vcmask 97344   ;;  %vm1653_vm5 = vcmask 1041408   ;;  %vm834_vm6 = vcmask 130144   ;;  %vm969_vm7 = vcmask 162944  }
  0x19   : > { %s176_s24 = scalar_select %p175_p10, %s2388_s16, 1  ;;  %vm1103_vm8 = vcmask 195744   ;;  %vm1234_vm9 = vcmask 228544   ;;  %vm1369_vm10 = vcmask 261344   ;;  %vm1503_vm11 = vcmask 294144  }
  0x1a   : > { %s2339_s5 = smov 16   ;;  %s2340_s6 = smov 20   ;;  %vm1604_vm12 = vcmask 293888  }
  0x1b   : > { %s2183_s25 = smul.u32 432, %s176_s24  ;;  %s2341_s7 = smov 24  }
  0x1c   : > { %s2342_s10 = smov 28   ;;  %s2343_s24 = smov 32  }
  0x1d   : > { %s2420_s28 = scalar_lea.vmem %s3815_s0, %s2183_s25  ;;  %s3634_s25 = sand.u32 1, %s2326_s13  }
  0x1e   : > { %v2423_v0 = vld [vmem:[%s2420_s28 + $0x18] sm:$0xff]  ;;  %v2426_v1 = vld [vmem:[%s2420_s28 + $0x20] sm:$0xff]  ;;  %v2434_v5 = vld [vmem:[%s2420_s28 + $0x8] sm:$0xff]  ;;  %s2088_s26 = sshll.u32 %s3634_s25, 8  ;;  %s2344_s9 = smov [#allocation3]  }
  0x1f   : > { %v2429_v2 = vld [vmem:[%s2420_s28] sm:$0xff]  ;;  %v322_v3 = vrot.slane %v2423_v0, 1  ;;  %v323_v4 = vrot.slane %v2426_v1, 1  ;;  %v2438_v7 = vld [vmem:[%s2420_s28 + $0x28] sm:$0x3]  ;;  %238 = vst.msk [vmem:[#allocation2 + $0x10] sm:$0xff] %vm235_vm0, %v2423_v0 }
  0x20   : > { %v317_v6 = vrot.slane %v2429_v2, 1  ;;  %236 = vst.msk [vmem:[#allocation2] sm:$0xff] %vm235_vm0, %v2429_v2  ;;  %239 = vst.msk [vmem:[#allocation2 + $0x18] sm:$0xff] %vm235_vm0, %v2426_v1  ;;  %v318_v8 = vrot.slane %v2434_v5, 1  ;;  %v325_v9 = vrot.slane %v2438_v7, 1  ;;  %v2452_v11 = vld [vmem:[%s2420_s28 + $0x38] sm:$0xff] }
  0x21   : > { %v2449_v10 = vld [vmem:[%s2420_s28 + $0x10] sm:$0x3]  ;;  %237 = vst.msk [vmem:[#allocation2 + $0x8] sm:$0xff] %vm235_vm0, %v2434_v5  ;;  %v2460_v13 = vsel %vm316_vm1, %v322_v3, %v323_v4  ;;  %v2464_v15 = vld [vmem:[%s2420_s28 + $0x40] sm:$0x3]  ;;  %241 = vst.msk [vmem:[#allocation2 + $0x28] sm:$0xff] %vm235_vm0, %v2452_v11 }
  0x22   : > { %v2455_v12 = vld [vmem:[%s2420_s28 + $0x30] sm:$0xff]  ;;  %v320_v14 = vrot.slane %v2449_v10, 1  ;;  %401 = vrot.lane.b32.xlu1 %v2460_v13, %s2336_s29  ;;  %v319_v17 = vsel %vm316_vm1, %v317_v6, %v318_v8  ;;  %v2477_v18 = vld [vmem:[%s2420_s28 + $0x48] sm:$0xff]  ;;  %v2486_v20 = vsel %vm316_vm1, %v323_v4, %v325_v9  ;;  %v328_v21 = vrot.slane %v2452_v11, 1  ;;  %v2491_v23 = vld [vmem:[%s2420_s28 + $0x60] sm:$0xff]  ;;  %s3641_s27 = scalar_lea.vmem [#allocation3], %s2088_s26 }
  0x23   : > { %v2467_v16 = vld [vmem:[%s2420_s28 + $0x50] sm:$0xff]  ;;  %240 = vst.msk [vmem:[#allocation2 + $0x20] sm:$0xff] %vm235_vm0, %v2455_v12  ;;  %v2480_v19 = vld [vmem:[%s2420_s28 + $0x68] sm:$0xff]  ;;  %397 = vrot.lane.b32.xlu0 %v319_v17, %s2336_s29  ;;  %v330_v22 = vrot.slane %v2464_v15, 1  ;;  %v2494_v24 = vld [vmem:[%s2420_s28 + $0x80] sm:$0xff]  ;;  %v327_v26 = vrot.slane %v2455_v12, 1 }
  0x24   : > { %243 = vst.msk [vmem:[#allocation2 + $0x38] sm:$0xff] %vm235_vm0, %v2467_v16  ;;  %242 = vst.msk [vmem:[#allocation2 + $0x30] sm:$0xff] %vm235_vm0, %v2477_v18  ;;  %v321_v25 = vsel %vm316_vm1, %v318_v8, %v320_v14  ;;  %v2503_v27 = vld [vmem:[%s2420_s28 + $0x58] sm:$0x3]  ;;  %v2516_v30 = vld [vmem:[%s2420_s28 + $0x90] sm:$0xff]  ;;  %v333_v34 = vrot.slane %v2467_v16, 1 }
  0x25   : > { %245 = vst.msk [vmem:[#allocation2 + $0x48] sm:$0xff] %vm235_vm0, %v2480_v19  ;;  %v2506_v28 = vld [vmem:[%s2420_s28 + $0x78] sm:$0xff]  ;;  %244 = vst.msk [vmem:[#allocation2 + $0x40] sm:$0xff] %vm235_vm0, %v2491_v23  ;;  %v2523_v31 = vld [vmem:[%s2420_s28 + $0xb0] sm:$0xff]  ;;  %v2534_v33 = vsel %vm316_vm1, %v328_v21, %v330_v22  ;;  %v335_v35 = vrot.slane %v2503_v27, 1  ;;  %v2549_v38 = vsel %vm316_vm1, %v327_v26, %v328_v21  ;;  %v332_v39 = vrot.slane %v2477_v18, 1 }
  0x26   : > { %247 = vst.msk [vmem:[#allocation2 + $0x58] sm:$0xff] %vm235_vm0, %v2494_v24  ;;  %v2513_v29 = vld [vmem:[%s2420_s28 + $0x98] sm:$0xff]  ;;  %246 = vst.msk [vmem:[#allocation2 + $0x50] sm:$0xff] %vm235_vm0, %v2506_v28  ;;  %403 = vrot.lane.b32.xlu1 %v2486_v20, %s2336_s29  ;;  %v2526_v32 = vld [vmem:[%s2420_s28 + $0xa8] sm:$0xff]  ;;  %v338_v48 = vrot.slane %v2480_v19, 1  ;;  %v337_v53 = vrot.slane %v2491_v23, 1 }
  0x27   : > { %248 = vst.msk [vmem:[#allocation2 + $0x60] sm:$0xff] %vm235_vm0, %v2516_v30  ;;  %249 = vst.msk [vmem:[#allocation2 + $0x68] sm:$0xff] %vm235_vm0, %v2513_v29  ;;  %399 = vrot.lane.b32.xlu0 %v321_v25, %s2336_s29  ;;  %v2539_v36 = vld [vmem:[%s2420_s28 + $0x70] sm:$0x3]  ;;  %v2542_v37 = vld [vmem:[%s2420_s28 + $0xc8] sm:$0xff]  ;;  %v2590_v47 = vsel %vm316_vm1, %v333_v34, %v335_v35  ;;  %v2605_v52 = vsel %vm316_vm1, %v332_v39, %v333_v34  ;;  %v343_v60 = vrot.slane %v2494_v24, 1 }
  0x28   : > { %3887 = vst [vmem:[#allocation9_spill] sm:$0xff] %v2542_v37  ;;  %250 = vst.msk [vmem:[#allocation2 + $0x70] sm:$0xff] %vm235_vm0, %v2526_v32  ;;  %v2553_v40 = vld [vmem:[%s2420_s28 + $0xc0] sm:$0xff]  ;;  %v2559_v42 = vld [vmem:[%s2420_s28 + $0xd8] sm:$0xff]  ;;  %v340_v49 = vrot.slane %v2539_v36, 1  ;;  %v2651_v3 = vsel %vm316_vm1, %v337_v53, %v338_v48  ;;  %v342_v4 = vrot.slane %v2506_v28, 1 }
  0x29   : > { %251 = vst.msk [vmem:[#allocation2 + $0x78] sm:$0xff] %vm235_vm0, %v2523_v31  ;;  %v2556_v41 = vld [vmem:[%s2420_s28 + $0xe0] sm:$0xff]  ;;  %253 = vst.msk [vmem:[#allocation2 + $0x88] sm:$0xff] %vm235_vm0, %v2542_v37  ;;  %v2564_v43 = vld [vmem:[%s2420_s28 + $0xf8] sm:$0xff]  ;;  %v348_v9 = vrot.slane %v2513_v29, 1  ;;  %v347_v21 = vrot.slane %v2516_v30, 1 }
  0x2a   : > { %3888 = vst [vmem:[#allocation10_spill] sm:$0xff] %v2556_v41  ;;  %3889 = vst [vmem:[#allocation11_spill] sm:$0xff] %v2564_v43  ;;  %v2567_v44 = vld [vmem:[%s2420_s28 + $0xf0] sm:$0xff]  ;;  %407 = vrot.lane.b32.xlu1 %v2534_v33, %s2336_s29  ;;  %v2581_v46 = vld [vmem:[%s2420_s28 + $0x108] sm:$0xff]  ;;  %v2636_v59 = vsel %vm316_vm1, %v338_v48, %v340_v49  ;;  %v2671_v17 = vsel %vm316_vm1, %v342_v4, %v343_v60  ;;  %v353_v26 = vrot.slane %v2523_v31, 1  ;;  %v352_v39 = vrot.slane %v2526_v32, 1 }
  0x2b   : > { %252 = vst.msk [vmem:[#allocation2 + $0x80] sm:$0xff] %vm235_vm0, %v2553_v40  ;;  %254 = vst.msk [vmem:[#allocation2 + $0x90] sm:$0xff] %vm235_vm0, %v2559_v42  ;;  %v2578_v45 = vld [vmem:[%s2420_s28 + $0x110] sm:$0xff]  ;;  %405 = vrot.lane.b32.xlu0 %v2549_v38, %s2336_s29  ;;  %v2595_v50 = vld [vmem:[%s2420_s28 + $0x128] sm:$0xff]  ;;  %v2687_v35 = vsel %vm316_vm1, %v347_v21, %v348_v9  ;;  %v358_v53 = vrot.slane %v2542_v37, 1  ;;  %v357_v4 = vrot.slane %v2553_v40, 1 }
  0x2c   : > { %255 = vst.msk [vmem:[#allocation2 + $0x98] sm:$0xff] %vm235_vm0, %v2556_v41  ;;  %3890 = vst [vmem:[#allocation12_spill] sm:$0xff] %v2578_v45  ;;  %v2598_v51 = vld [vmem:[%s2420_s28 + $0x120] sm:$0xff]  ;;  %v2609_v54 = vld [vmem:[%s2420_s28 + $0x88] sm:$0x3]  ;;  %v363_v21 = vrot.slane %v2556_v41, 1 }
  0x2d   : > { %256 = vst.msk [vmem:[#allocation2 + $0xa0] sm:$0xff] %vm235_vm0, %v2567_v44  ;;  %257 = vst.msk [vmem:[#allocation2 + $0xa8] sm:$0xff] %vm235_vm0, %v2564_v43  ;;  %v2612_v55 = vld [vmem:[%s2420_s28 + $0x140] sm:$0xff]  ;;  %v2619_v56 = vld [vmem:[%s2420_s28 + $0x138] sm:$0xff]  ;;  %v345_v61 = vrot.slane %v2609_v54, 1 }
  0x2e   : > { %3891 = vst [vmem:[#allocation13_spill] sm:$0xff] %v2595_v50  ;;  %258 = vst.msk [vmem:[#allocation2 + $0xb0] sm:$0xff] %vm235_vm0, %v2581_v46  ;;  %411 = vrot.lane.b32.xlu1 %v2590_v47, %s2336_s29  ;;  %v2626_v57 = vld [vmem:[%s2420_s28 + $0x158] sm:$0xff]  ;;  %v2629_v58 = vld [vmem:[%s2420_s28 + $0x150] sm:$0xff] }
  0x2f   : > { %259 = vst.msk [vmem:[#allocation2 + $0xb8] sm:$0xff] %vm235_vm0, %v2578_v45  ;;  %3892 = vst [vmem:[#allocation14_spill] sm:$0xff] %v2605_v52  ;;  %409 = vrot.lane.b32.xlu0 %v2605_v52, %s2336_s29  ;;  %v2641_v62 = vld [vmem:[%s2420_s28 + $0x170] sm:$0xff]  ;;  %v2644_v63 = vld [vmem:[%s2420_s28 + $0x168] sm:$0xff]  ;;  %v2666_v8 = vsel %vm316_vm1, %v343_v60, %v345_v61  ;;  %v2703_v61 = vsel %vm316_vm1, %v352_v39, %v353_v26  ;;  %v362_v39 = vrot.slane %v2559_v42, 1 }
  0x30   : > { %3893 = vst [vmem:[#allocation15_spill] sm:$0xff] %v2612_v55  ;;  %260 = vst.msk [vmem:[#allocation2 + $0xc0] sm:$0xff] %vm235_vm0, %v2598_v51  ;;  %v2655_v6 = vld [vmem:[%s2420_s28 + $0xa0] sm:$0x3]  ;;  %v2675_v22 = vld [vmem:[%s2420_s28 + $0xb8] sm:$0x3] }
  0x31   : > { %261 = vst.msk [vmem:[#allocation2 + $0xc8] sm:$0xff] %vm235_vm0, %v2595_v50  ;;  %3894 = vst [vmem:[#allocation16_spill] sm:$0xff] %v2619_v56  ;;  %v350_v14 = vrot.slane %v2655_v6, 1  ;;  %v355_v34 = vrot.slane %v2675_v22, 1  ;;  %v2691_v48 = vld [vmem:[%s2420_s28 + $0xd0] sm:$0x3] }
  0x32   : > { %263 = vst.msk [vmem:[#allocation2 + $0xd8] sm:$0xff] %vm235_vm0, %v2612_v55  ;;  %3895 = vst [vmem:[#allocation17_spill] sm:$0xff] %v2629_v58  ;;  %415 = vrot.lane.b32.xlu1 %v2636_v59, %s2336_s29  ;;  %v360_v60 = vrot.slane %v2691_v48, 1 }
  0x33   : > { %262 = vst.msk [vmem:[#allocation2 + $0xd0] sm:$0xff] %vm235_vm0, %v2619_v56  ;;  %3896 = vst [vmem:[#allocation18_spill] sm:$0xff] %v2636_v59  ;;  %413 = vrot.lane.b32.xlu0 %v2651_v3, %s2336_s29  ;;  %v2682_v25 = vsel %vm316_vm1, %v348_v9, %v350_v14  ;;  %v2698_v49 = vsel %vm316_vm1, %v353_v26, %v355_v34  ;;  %v2707_v9 = vld [vmem:[%s2420_s28 + $0xe8] sm:$0x3]  ;;  %v2719_v26 = vsel %vm316_vm1, %v357_v4, %v358_v53  ;;  %v2803_v59 = vld [vmem:[%s2420_s28 + $0x178] sm:$0x3] }
  0x34   : > { %264 = vst.msk [vmem:[#allocation2 + $0xe0] sm:$0xff] %vm235_vm0, %v2629_v58  ;;  %265 = vst.msk [vmem:[#allocation2 + $0xe8] sm:$0xff] %vm235_vm0, %v2626_v57  ;;  %v2714_v14 = vsel %vm316_vm1, %v358_v53, %v360_v60  ;;  %v365_v34 = vrot.slane %v2707_v9, 1  ;;  %v2735_v53 = vsel %vm316_vm1, %v362_v39, %v363_v21  ;;  %v367_v4 = vrot.slane %v2567_v44, 1 }
  0x35   : > { %3897 = vst [vmem:[#allocation19_spill] sm:$0xff] %v2651_v3  ;;  %266 = vst.msk [vmem:[#allocation2 + $0xf0] sm:$0xff] %vm235_vm0, %v2644_v63  ;;  %v372_v39 = vrot.slane %v2581_v46, 1  ;;  %v2787_v3 = vld [vmem:[%s2420_s28 + $0x160] sm:$0x3] }
  0x36   : > { %267 = vst.msk [vmem:[#allocation2 + $0xf8] sm:$0xff] %vm235_vm0, %v2641_v62  ;;  %3898 = vst [vmem:[#allocation20_spill] sm:$0xff] %v2666_v8  ;;  %419 = vrot.lane.b32.xlu1 %v2666_v8, %s2336_s29  ;;  %v2730_v60 = vsel %vm316_vm1, %v363_v21, %v365_v34  ;;  %v2771_v8 = vld [vmem:[%s2420_s28 + $0x148] sm:$0x3] }
  0x37   : > { %3899 = vst [vmem:[#allocation21_spill] sm:$0xff] %v2671_v17  ;;  %417 = vrot.lane.b32.xlu0 %v2671_v17, %s2336_s29  ;;  %3900 = vst [vmem:[#allocation22_spill] sm:$0xff] %v2682_v25  ;;  %v2755_v17 = vld [vmem:[%s2420_s28 + $0x130] sm:$0x3] }
  0x38   : > { %3901 = vst [vmem:[#allocation23_spill] sm:$0xff] %v2687_v35  ;;  %3902 = vst [vmem:[#allocation24_spill] sm:$0xff] %v2698_v49 }
  0x39   : > { %3903 = vst [vmem:[#allocation25_spill] sm:$0xff] %v2703_v61  ;;  %3904 = vst [vmem:[#allocation26_spill] sm:$0xff] %v2714_v14 }
  0x3a   : > { %423 = vrot.lane.b32.xlu1 %v2682_v25, %s2336_s29  ;;  %3905 = vst [vmem:[#allocation27_spill] sm:$0xff] %v2719_v26  ;;  %3906 = vst [vmem:[#allocation28_spill] sm:$0xff] %v2730_v60  ;;  %v2739_v25 = vld [vmem:[%s2420_s28 + $0x118] sm:$0x3] }
  0x3b   : > { %421 = vrot.lane.b32.xlu0 %v2687_v35, %s2336_s29  ;;  %v2723_v35 = vld [vmem:[%s2420_s28 + $0x100] sm:$0x3]  ;;  %3907 = vst [vmem:[#allocation29_spill] sm:$0xff] %v2735_v53 }
  0x3e   : > { %427 = vrot.lane.b32.xlu1 %v2698_v49, %s2336_s29  ;;  %v370_v49 = vrot.slane %v2723_v35, 1 }
  0x3f   : > { %425 = vrot.lane.b32.xlu0 %v2703_v61, %s2336_s29  ;;  %v368_v61 = vrot.slane %v2564_v43, 1 }
  0x41   : > { %v2746_v34 = vsel %vm316_vm1, %v368_v61, %v370_v49  ;;  %v2751_v21 = vsel %vm316_vm1, %v367_v4, %v368_v61  ;;  %v377_v4 = vrot.slane %v2598_v51, 1 }
  0x42   : > { %431 = vrot.lane.b32.xlu1 %v2714_v14, %s2336_s29  ;;  %3908 = vst [vmem:[#allocation30_spill] sm:$0xff] %v2746_v34  ;;  %v375_v14 = vrot.slane %v2739_v25, 1  ;;  %3909 = vst [vmem:[#allocation31_spill] sm:$0xff] %v2751_v21 }
  0x43   : > { %429 = vrot.lane.b32.xlu0 %v2719_v26, %s2336_s29  ;;  %v373_v26 = vrot.slane %v2578_v45, 1 }
  0x45   : > { %v2762_v49 = vsel %vm316_vm1, %v373_v26, %v375_v14  ;;  %v2767_v61 = vsel %vm316_vm1, %v372_v39, %v373_v26  ;;  %v382_v39 = vrot.slane %v2619_v56, 1 }
  0x46   : > { %435 = vrot.lane.b32.xlu1 %v2730_v60, %s2336_s29  ;;  %3910 = vst [vmem:[#allocation32_spill] sm:$0xff] %v2762_v49  ;;  %v380_v60 = vrot.slane %v2755_v17, 1  ;;  %3911 = vst [vmem:[#allocation33_spill] sm:$0xff] %v2767_v61 }
  0x47   : > { %433 = vrot.lane.b32.xlu0 %v2735_v53, %s2336_s29  ;;  %v378_v53 = vrot.slane %v2595_v50, 1 }
  0x49   : > { %v2778_v14 = vsel %vm316_vm1, %v378_v53, %v380_v60  ;;  %v2783_v26 = vsel %vm316_vm1, %v377_v4, %v378_v53  ;;  %v387_v4 = vrot.slane %v2629_v58, 1 }
  0x4a   : > { %439 = vrot.lane.b32.xlu1 %v2746_v34, %s2336_s29  ;;  %3912 = vst [vmem:[#allocation34_spill] sm:$0xff] %v2778_v14  ;;  %v385_v34 = vrot.slane %v2771_v8, 1  ;;  %3913 = vst [vmem:[#allocation35_spill] sm:$0xff] %v2783_v26 }
  0x4b   : > { %437 = vrot.lane.b32.xlu0 %v2751_v21, %s2336_s29  ;;  %v383_v21 = vrot.slane %v2612_v55, 1 }
  0x4d   : > { %v2794_v60 = vsel %vm316_vm1, %v383_v21, %v385_v34  ;;  %v2799_v53 = vsel %vm316_vm1, %v382_v39, %v383_v21  ;;  %v392_v39 = vrot.slane %v2644_v63, 1 }
  0x4e   : > { %443 = vrot.lane.b32.xlu1 %v2762_v49, %s2336_s29  ;;  %3914 = vst [vmem:[#allocation36_spill] sm:$0xff] %v2794_v60  ;;  %v390_v49 = vrot.slane %v2787_v3, 1  ;;  %3915 = vst [vmem:[#allocation37_spill] sm:$0xff] %v2799_v53 }
  0x4f   : > { %441 = vrot.lane.b32.xlu0 %v2767_v61, %s2336_s29  ;;  %v388_v61 = vrot.slane %v2626_v57, 1 }
  0x51   : > { %v2810_v34 = vsel %vm316_vm1, %v388_v61, %v390_v49  ;;  %v2815_v21 = vsel %vm316_vm1, %v387_v4, %v388_v61  ;;  %v528_v49 = vrot.slane %v2434_v5, 2  ;;  %v527_v61 = vrot.slane %v2429_v2, 2 }
  0x52   : > { %447 = vrot.lane.b32.xlu1 %v2778_v14, %s2336_s29  ;;  %3916 = vst [vmem:[#allocation38_spill] sm:$0xff] %v2810_v34  ;;  %v395_v14 = vrot.slane %v2803_v59, 1  ;;  %3917 = vst [vmem:[#allocation39_spill] sm:$0xff] %v2815_v21  ;;  %v535_v5 = vrot.slane %v2438_v7, 2  ;;  %v537_v7 = vrot.slane %v2455_v12, 2 }
  0x53   : > { %445 = vrot.lane.b32.xlu0 %v2783_v26, %s2336_s29  ;;  %v393_v26 = vrot.slane %v2641_v62, 1 }
  0x55   : > { %v2828_v52 = vsel %vm316_vm1, %v392_v39, %v393_v26  ;;  %v538_v39 = vrot.slane %v2452_v11, 2 }
  0x56   : > { %451 = vrot.lane.b32.xlu1 %v2794_v60, %s2336_s29  ;;  %v530_v60 = vrot.slane %v2449_v10, 2  ;;  %3919 = vst [vmem:[#allocation41_spill] sm:$0xff] %v2828_v52  ;;  %v529_v10 = vsel %vm526_vm2, %v527_v61, %v528_v49  ;;  %v543_v61 = vrot.slane %v2467_v16, 2 }
  0x57   : > { %449 = vrot.lane.b32.xlu0 %v2799_v53, %s2336_s29  ;;  %v2823_v53 = vsel %vm316_vm1, %v393_v26, %v395_v14  ;;  %v533_v14 = vrot.slane %v2426_v1, 2  ;;  %v532_v26 = vrot.slane %v2423_v0, 2 }
  0x58   : > { %3918 = vst [vmem:[#allocation40_spill] sm:$0xff] %v2823_v53  ;;  %v531_v4 = vsel %vm526_vm2, %v528_v49, %v530_v60  ;;  %v540_v60 = vrot.slane %v2464_v15, 2  ;;  %v2861_v15 = vsel %vm526_vm2, %v537_v7, %v538_v39  ;;  %v553_v7 = vrot.slane %v2494_v24, 2 }
  0x59   : > { %v2843_v2 = vsel %vm526_vm2, %v533_v14, %v535_v5 }
  0x5a   : > { %455 = vrot.lane.b32.xlu1 %v2810_v34, %s2336_s29  ;;  %v2856_v49 = vsel %vm526_vm2, %v538_v39, %v540_v60  ;;  %v547_v39 = vrot.slane %v2491_v23, 2  ;;  %v570_v34 = vrot.slane %v2691_v48, 2 }
  0x5b   : > { %453 = vrot.lane.b32.xlu0 %v2815_v21, %s2336_s29  ;;  %v565_v21 = vrot.slane %v2675_v22, 2 }
  0x5e   : > { %459 = vrot.lane.b32.xlu1 %v2823_v53, %s2336_s29  ;;  %v560_v53 = vrot.slane %v2655_v6, 2 }
  0x5f   : > { %457 = vrot.lane.b32.xlu0 %v2828_v52, %s2336_s29  ;;  %v2848_v52 = vsel %vm526_vm2, %v532_v26, %v533_v14  ;;  %v542_v14 = vrot.slane %v2477_v18, 2  ;;  %v550_v26 = vrot.slane %v2539_v36, 2  ;;  %s1977_s29 = sshll.u32 %s3641_s27, 4  ;;  %s3738_s29 = int_to_ptr.vmem [resolvable:$true] %s1977_s29 }
  0x60   : > { %s2240_s8 = scalar_lea.vmem %s3738_s29, 4096 }
  0x61   : > { %p2241_p11 = scmp.ne.s32.totalorder %s3738_s29, %s2240_s8 }
  0x62   : > { %609 = vrot.lane.b32.xlu1 %v531_v4, %s2337_s30  ;;  %v545_v4 = vrot.slane %v2503_v27, 2  ;;  %v2874_v27 = vsel %vm526_vm2, %v542_v14, %v543_v61 }
  0x63   : > { %607 = vrot.lane.b32.xlu0 %v529_v10, %s2337_s30  ;;  %v548_v10 = vrot.slane %v2480_v19, 2  ;;  %p2242_p12 = pnand %p2241_p11, %p2405_p5 }
  0x64   : > { %v2869_v5 = vsel %vm526_vm2, %v543_v61, %v545_v4  ;;  %v555_v4 = vrot.slane %v2609_v54, 2  ;;  %v552_v61 = vrot.slane %v2506_v28, 2 }
  0x65   : > { %v2882_v60 = vsel %vm526_vm2, %v548_v10, %v550_v26  ;;  %v2887_v36 = vsel %vm526_vm2, %v547_v39, %v548_v10  ;;  %v558_v26 = vrot.slane %v2513_v29, 2  ;;  %v557_v10 = vrot.slane %v2516_v30, 2  ;;  %p2243_p13 = pneg %p2242_p12 }
  0x66   : > { %613 = vrot.lane.b32.xlu1 %v2843_v2, %s2337_s30  ;;  %v2895_v14 = vsel %vm526_vm2, %v553_v7, %v555_v4  ;;  %v2900_v54 = vsel %vm526_vm2, %v552_v61, %v553_v7  ;;  %v563_v4 = vrot.slane %v2523_v31, 2  ;;  %v562_v7 = vrot.slane %v2526_v32, 2 }
  0x67   : > { %611 = vrot.lane.b32.xlu0 %v2848_v52, %s2337_s30  ;;  %v2908_v39 = vsel %vm526_vm2, %v558_v26, %v560_v53  ;;  %v2913_v6 = vsel %vm526_vm2, %v557_v10, %v558_v26  ;;  %v568_v53 = vrot.slane %v2542_v37, 2  ;;  %v567_v26 = vrot.slane %v2553_v40, 2 }
  0x68   : > { %v2921_v61 = vsel %vm526_vm2, %v563_v4, %v565_v21  ;;  %v2926_v22 = vsel %vm526_vm2, %v562_v7, %v563_v4  ;;  %v573_v21 = vrot.slane %v2556_v41, 2  ;;  %v575_v37 = vrot.slane %v2707_v9, 2 }
  0x69   : > { %v2934_v10 = vsel %vm526_vm2, %v568_v53, %v570_v34  ;;  %v2939_v48 = vsel %vm526_vm2, %v567_v26, %v568_v53  ;;  %v572_v4 = vrot.slane %v2559_v42, 2  ;;  %v578_v34 = vrot.slane %v2564_v43, 2 }
  0x6a   : > { %617 = vrot.lane.b32.xlu1 %v2856_v49, %s2337_s30  ;;  %v2947_v7 = vsel %vm526_vm2, %v573_v21, %v575_v37  ;;  %v580_v41 = vrot.slane %v2723_v35, 2  ;;  %v577_v53 = vrot.slane %v2567_v44, 2  ;;  %v583_v37 = vrot.slane %v2578_v45, 2 }
  0x6b   : > { %615 = vrot.lane.b32.xlu0 %v2861_v15, %s2337_s30  ;;  %v2952_v9 = vsel %vm526_vm2, %v572_v4, %v573_v21  ;;  %v585_v43 = vrot.slane %v2739_v25, 2  ;;  %v582_v21 = vrot.slane %v2581_v46, 2  ;;  %v590_v45 = vrot.slane %v2755_v17, 2 }
  0x6c   : > { %v2960_v26 = vsel %vm526_vm2, %v578_v34, %v580_v41  ;;  %v2965_v35 = vsel %vm526_vm2, %v577_v53, %v578_v34  ;;  %v588_v41 = vrot.slane %v2595_v50, 2  ;;  %v587_v34 = vrot.slane %v2598_v51, 2 }
  0x6d   : > { %v2973_v4 = vsel %vm526_vm2, %v583_v37, %v585_v43  ;;  %v2978_v25 = vsel %vm526_vm2, %v582_v21, %v583_v37  ;;  %v593_v43 = vrot.slane %v2612_v55, 2  ;;  %v595_v50 = vrot.slane %v2771_v8, 2 }
  0x6e   : > { %621 = vrot.lane.b32.xlu1 %v2869_v5, %s2337_s30  ;;  %v2986_v53 = vsel %vm526_vm2, %v588_v41, %v590_v45  ;;  %v2991_v17 = vsel %vm526_vm2, %v587_v34, %v588_v41  ;;  %v592_v37 = vrot.slane %v2619_v56, 2  ;;  %v598_v45 = vrot.slane %v2626_v57, 2 }
  0x6f   : > { %619 = vrot.lane.b32.xlu0 %v2874_v27, %s2337_s30  ;;  %v2999_v21 = vsel %vm526_vm2, %v593_v43, %v595_v50  ;;  %v600_v55 = vrot.slane %v2787_v3, 2  ;;  %v597_v34 = vrot.slane %v2629_v58, 2  ;;  %v603_v3 = vrot.slane %v2641_v62, 2 }
  0x70   : > { %v3004_v41 = vsel %vm526_vm2, %v592_v37, %v593_v43  ;;  %v605_v43 = vrot.slane %v2803_v59, 2 }
  0x71   : > { %v3014_v50 = vsel %vm526_vm2, %v598_v45, %v600_v55  ;;  %v3019_v58 = vsel %vm526_vm2, %v597_v34, %v598_v45 }
  0x72   : > { %625 = vrot.lane.b32.xlu1 %v2882_v60, %s2337_s30  ;;  %v3029_v55 = vsel %vm526_vm2, %v603_v3, %v605_v43 }
  0x73   : > { %623 = vrot.lane.b32.xlu0 %v2887_v36, %s2337_s30 }
  0x76   : > { %629 = vrot.lane.b32.xlu1 %v2895_v14, %s2337_s30 }
  0x77   : > { %627 = vrot.lane.b32.xlu0 %v2900_v54, %s2337_s30 }
  0x7a   : > { %633 = vrot.lane.b32.xlu1 %v2908_v39, %s2337_s30 }
  0x7b   : > { %631 = vrot.lane.b32.xlu0 %v2913_v6, %s2337_s30 }
  0x7e   : > { %637 = vrot.lane.b32.xlu1 %v2921_v61, %s2337_s30 }
  0x7f   : > { %635 = vrot.lane.b32.xlu0 %v2926_v22, %s2337_s30 }
  0x82   : > { %641 = vrot.lane.b32.xlu1 %v2934_v10, %s2337_s30 }
  0x83   : > { %639 = vrot.lane.b32.xlu0 %v2939_v48, %s2337_s30 }
  0x86   : > { %645 = vrot.lane.b32.xlu1 %v2947_v7, %s2337_s30 }
  0x87   : > { %643 = vrot.lane.b32.xlu0 %v2952_v9, %s2337_s30 }
  0x8a   : > { %649 = vrot.lane.b32.xlu1 %v2960_v26, %s2337_s30 }
  0x8b   : > { %647 = vrot.lane.b32.xlu0 %v2965_v35, %s2337_s30 }
  0x8e   : > { %653 = vrot.lane.b32.xlu1 %v2973_v4, %s2337_s30 }
  0x8f   : > { %651 = vrot.lane.b32.xlu0 %v2978_v25, %s2337_s30 }
  0x92   : > { %657 = vrot.lane.b32.xlu1 %v2986_v53, %s2337_s30 }
  0x93   : > { %655 = vrot.lane.b32.xlu0 %v2991_v17, %s2337_s30 }
  0x94   : > { %v402_v8 = vpop.permute.xlu1 %401 }
  0x95   : > { %496 = vst.msk [vmem:[#allocation2 + $0x10] sm:$0xff] %vm493_vm3, %v402_v8  ;;  %v398_v56 = vpop.permute.xlu0 %397  ;;  %v602_v8 = vrot.slane %v2644_v63, 2 }
  0x96   : > { %494 = vst.msk [vmem:[#allocation2] sm:$0xff] %vm493_vm3, %v398_v56  ;;  %661 = vrot.lane.b32.xlu1 %v2999_v21, %s2337_s30 }
  0x97   : > { %659 = vrot.lane.b32.xlu0 %v3004_v41, %s2337_s30  ;;  %v3032_v45 = vsel %vm526_vm2, %v602_v8, %v603_v3 }
  0x98   : > { %v404_v37 = vpop.permute.xlu1 %403 }
  0x99   : > { %497 = vst.msk [vmem:[#allocation2 + $0x18] sm:$0xff] %vm493_vm3, %v404_v37  ;;  %v400_v56 = vpop.permute.xlu0 %399 }
  0x9a   : > { %495 = vst.msk [vmem:[#allocation2 + $0x8] sm:$0xff] %vm493_vm3, %v400_v56  ;;  %665 = vrot.lane.b32.xlu1 %v3014_v50, %s2337_s30 }
  0x9b   : > { %663 = vrot.lane.b32.xlu0 %v3019_v58, %s2337_s30 }
  0x9c   : > { %v408_v59 = vpop.permute.xlu1 %407 }
  0x9d   : > { %499 = vst.msk [vmem:[#allocation2 + $0x28] sm:$0xff] %vm493_vm3, %v408_v59  ;;  %v406_v34 = vpop.permute.xlu0 %405 }
  0x9e   : > { %498 = vst.msk [vmem:[#allocation2 + $0x20] sm:$0xff] %vm493_vm3, %v406_v34  ;;  %669 = vrot.lane.b32.xlu1 %v3029_v55, %s2337_s30 }
  0x9f   : > { %667 = vrot.lane.b32.xlu0 %v3032_v45, %s2337_s30 }
  0xa0   : > { %v412_v37 = vpop.permute.xlu1 %411 }
  0xa1   : > { %501 = vst.msk [vmem:[#allocation2 + $0x38] sm:$0xff] %vm493_vm3, %v412_v37  ;;  %v410_v43 = vpop.permute.xlu0 %409 }
  0xa2   : > { %500 = vst.msk [vmem:[#allocation2 + $0x30] sm:$0xff] %vm493_vm3, %v410_v43  ;;  %740 = vrot.lane.b32.xlu1 %v2426_v1, %s2338_s4 }
  0xa3   : > { %738 = vrot.lane.b32.xlu0 %v2423_v0, %s2338_s4 }
  0xa4   : > { %v416_v3 = vpop.permute.xlu1 %415 }
  0xa5   : > { %503 = vst.msk [vmem:[#allocation2 + $0x48] sm:$0xff] %vm493_vm3, %v416_v3  ;;  %v414_v8 = vpop.permute.xlu0 %413 }
  0xa6   : > { %502 = vst.msk [vmem:[#allocation2 + $0x40] sm:$0xff] %vm493_vm3, %v414_v8  ;;  %744 = vrot.lane.b32.xlu1 %v2452_v11, %s2338_s4 }
  0xa7   : > { %742 = vrot.lane.b32.xlu0 %v2455_v12, %s2338_s4 }
  0xa8   : > { %v420_v56 = vpop.permute.xlu1 %419 }
  0xa9   : > { %505 = vst.msk [vmem:[#allocation2 + $0x58] sm:$0xff] %vm493_vm3, %v420_v56  ;;  %v418_v59 = vpop.permute.xlu0 %417 }
  0xaa   : > { %504 = vst.msk [vmem:[#allocation2 + $0x50] sm:$0xff] %vm493_vm3, %v418_v59  ;;  %748 = vrot.lane.b32.xlu1 %v2467_v16, %s2338_s4 }
  0xab   : > { %746 = vrot.lane.b32.xlu0 %v2477_v18, %s2338_s4 }
  0xac   : > { %v424_v0 = vpop.permute.xlu1 %423 }
  0xad   : > { %507 = vst.msk [vmem:[#allocation2 + $0x68] sm:$0xff] %vm493_vm3, %v424_v0  ;;  %v422_v1 = vpop.permute.xlu0 %421 }
  0xae   : > { %506 = vst.msk [vmem:[#allocation2 + $0x60] sm:$0xff] %vm493_vm3, %v422_v1  ;;  %752 = vrot.lane.b32.xlu1 %v2480_v19, %s2338_s4 }
  0xaf   : > { %750 = vrot.lane.b32.xlu0 %v2491_v23, %s2338_s4 }
  0xb0   : > { %v428_v34 = vpop.permute.xlu1 %427 }
  0xb1   : > { %509 = vst.msk [vmem:[#allocation2 + $0x78] sm:$0xff] %vm493_vm3, %v428_v34  ;;  %v426_v37 = vpop.permute.xlu0 %425 }
  0xb2   : > { %508 = vst.msk [vmem:[#allocation2 + $0x70] sm:$0xff] %vm493_vm3, %v426_v37  ;;  %756 = vrot.lane.b32.xlu1 %v2494_v24, %s2338_s4  ;;  %v2237_v37 = vld [vmem:[%s3816_s1] sm:$0xff]  }
  0xb3   : > { %754 = vrot.lane.b32.xlu0 %v2506_v28, %s2338_s4  ;;  %2137 = vmatprep.subr.bf16.mxu0 %v2237_v37 }
  0xb4   : > { %v432_v43 = vpop.permute.xlu1 %431  ;;  %2175 = vmatprep.subr.bf16.mxu1 %v2237_v37  ;;  %2138 = vmatpush3.bf16.msra.mxu0 %v2237_v37 }
  0xb5   : > { %511 = vst.msk [vmem:[#allocation2 + $0x88] sm:$0xff] %vm493_vm3, %v432_v43  ;;  %v430_v3 = vpop.permute.xlu0 %429  ;;  %2178 = vmatpush3.bf16.msra.mxu1 %v2237_v37 }
  0xb6   : > { %510 = vst.msk [vmem:[#allocation2 + $0x80] sm:$0xff] %vm493_vm3, %v430_v3  ;;  %875 = vrot.lane.b32.xlu1 %v2486_v20, %s2339_s5 }
  0xb7   : > { %873 = vrot.lane.b32.xlu0 %v2460_v13, %s2339_s5 }
  0xb8   : > { %v436_v8 = vpop.permute.xlu1 %435 }
  0xb9   : > { %513 = vst.msk [vmem:[#allocation2 + $0x98] sm:$0xff] %vm493_vm3, %v436_v8  ;;  %v434_v56 = vpop.permute.xlu0 %433 }
  0xba   : > { %512 = vst.msk [vmem:[#allocation2 + $0x90] sm:$0xff] %vm493_vm3, %v434_v56  ;;  %879 = vrot.lane.b32.xlu1 %v2534_v33, %s2339_s5 }
  0xbb   : > { %877 = vrot.lane.b32.xlu0 %v2549_v38, %s2339_s5 }
  0xbc   : > { %v440_v59 = vpop.permute.xlu1 %439 }
  0xbd   : > { %515 = vst.msk [vmem:[#allocation2 + $0xa8] sm:$0xff] %vm493_vm3, %v440_v59  ;;  %v438_v0 = vpop.permute.xlu0 %437 }
  0xbe   : > { %514 = vst.msk [vmem:[#allocation2 + $0xa0] sm:$0xff] %vm493_vm3, %v438_v0  ;;  %1009 = vrot.lane.b32.xlu1 %v2843_v2, %s2340_s6 }
  0xbf   : > { %1007 = vrot.lane.b32.xlu0 %v2848_v52, %s2340_s6 }
  0xc0   : > { %v444_v13 = vpop.permute.xlu1 %443 }
  0xc1   : > { %517 = vst.msk [vmem:[#allocation2 + $0xb8] sm:$0xff] %vm493_vm3, %v444_v13  ;;  %v442_v20 = vpop.permute.xlu0 %441 }
  0xc2   : > { %516 = vst.msk [vmem:[#allocation2 + $0xb0] sm:$0xff] %vm493_vm3, %v442_v20  ;;  %1013 = vrot.lane.b32.xlu1 %v2856_v49, %s2340_s6 }
  0xc3   : > { %1011 = vrot.lane.b32.xlu0 %v2861_v15, %s2340_s6 }
  0xc4   : > { %v448_v1 = vpop.permute.xlu1 %447 }
  0xc5   : > { %519 = vst.msk [vmem:[#allocation2 + $0xc8] sm:$0xff] %vm493_vm3, %v448_v1  ;;  %v446_v34 = vpop.permute.xlu0 %445  ;;  %v3921_v1 = vld [vmem:[#allocation18_spill] sm:$0xff] }
  0xc6   : > { %518 = vst.msk [vmem:[#allocation2 + $0xc0] sm:$0xff] %vm493_vm3, %v446_v34  ;;  %1140 = vrot.lane.b32.xlu1 %v2452_v11, %s2341_s7  ;;  %v3922_v34 = vld [vmem:[#allocation19_spill] sm:$0xff] }
  0xc7   : > { %1138 = vrot.lane.b32.xlu0 %v2455_v12, %s2341_s7 }
  0xc8   : > { %v452_v52 = vpop.permute.xlu1 %451 }
  0xc9   : > { %521 = vst.msk [vmem:[#allocation2 + $0xd8] sm:$0xff] %vm493_vm3, %v452_v52  ;;  %v450_v2 = vpop.permute.xlu0 %449 }
  0xca   : > { %520 = vst.msk [vmem:[#allocation2 + $0xd0] sm:$0xff] %vm493_vm3, %v450_v2  ;;  %1144 = vrot.lane.b32.xlu1 %v2467_v16, %s2341_s7  ;;  %v2238_v16 = vld [vmem:[%s3816_s1 + $0x8] sm:$0xff]  }
  0xcb   : > { %1142 = vrot.lane.b32.xlu0 %v2477_v18, %s2341_s7  ;;  %2139 = vmatprep.subr.bf16.mxu0 %v2238_v16 }
  0xcc   : > { %v456_v11 = vpop.permute.xlu1 %455  ;;  %2176 = vmatprep.subr.bf16.mxu1 %v2238_v16  ;;  %2140 = vmatpush3.bf16.msra.mxu0 %v2238_v16 }
  0xcd   : > { %523 = vst.msk [vmem:[#allocation2 + $0xe8] sm:$0xff] %vm493_vm3, %v456_v11  ;;  %v454_v12 = vpop.permute.xlu0 %453  ;;  %2179 = vmatpush3.bf16.msra.mxu1 %v2238_v16 }
  0xce   : > { %522 = vst.msk [vmem:[#allocation2 + $0xe0] sm:$0xff] %vm493_vm3, %v454_v12  ;;  %1275 = vrot.lane.b32.xlu1 %v2534_v33, %s2342_s10  ;;  %v2239_v33 = vld [vmem:[%s3816_s1 + $0x10] ss:$0 sps:$4 sm:$0x33]  }
  0xcf   : > { %1273 = vrot.lane.b32.xlu0 %v2549_v38, %s2342_s10  ;;  %v3920_v38 = vld [vmem:[#allocation14_spill] sm:$0xff]  ;;  %2181 = vmatprep.subr.msk.bf16.mxu0 %vm1653_vm5, %v2239_v33  ;;  %v1655_v8 = vsel %vm1653_vm5, %v2239_v33, 0 }
  0xd0   : > { %v460_v18 = vpop.permute.xlu1 %459  ;;  %2182 = vmatprep.subr.msk.bf16.mxu1 %vm1653_vm5, %v2239_v33  ;;  %2142 = vmatpush3.bf16.msra.mxu0 %v1655_v8 }
  0xd1   : > { %525 = vst.msk [vmem:[#allocation2 + $0xf8] sm:$0xff] %vm493_vm3, %v460_v18  ;;  %v458_v43 = vpop.permute.xlu0 %457  ;;  %2180 = vmatpush3.bf16.msra.mxu1 %v1655_v8 }
  0xd2   : > { %524 = vst.msk [vmem:[#allocation2 + $0xf0] sm:$0xff] %vm493_vm3, %v458_v43  ;;  %1279 = vrot.lane.b32.xlu1 %v2590_v47, %s2342_s10 }
  0xd3   : > { %1277 = vrot.lane.b32.xlu0 %v3920_v38, %s2342_s10 }
  0xd4   : > { %v610_v3 = vpop.permute.xlu1 %609 }
  0xd5   : > { %705 = vst.msk [vmem:[#allocation2 + $0x8] sm:$0xff] %vm703_vm4, %v610_v3  ;;  %v608_v56 = vpop.permute.xlu0 %607 }
  0xd6   : > { %704 = vst.msk [vmem:[#allocation2] sm:$0xff] %vm703_vm4, %v608_v56  ;;  %1409 = vrot.lane.b32.xlu1 %v2856_v49, %s2343_s24 }
  0xd7   : > { %1407 = vrot.lane.b32.xlu0 %v2861_v15, %s2343_s24 }
  0xd8   : > { %v614_v59 = vpop.permute.xlu1 %613 }
  0xd9   : > { %707 = vst.msk [vmem:[#allocation2 + $0x18] sm:$0xff] %vm703_vm4, %v614_v59  ;;  %v612_v0 = vpop.permute.xlu0 %611 }
  0xda   : > { %706 = vst.msk [vmem:[#allocation2 + $0x10] sm:$0xff] %vm703_vm4, %v612_v0  ;;  %1413 = vrot.lane.b32.xlu1 %v2869_v5, %s2343_s24 }
  0xdb   : > { %1411 = vrot.lane.b32.xlu0 %v2874_v27, %s2343_s24 }
  0xdc   : > { %v618_v13 = vpop.permute.xlu1 %617 }
  0xdd   : > { %709 = vst.msk [vmem:[#allocation2 + $0x28] sm:$0xff] %vm703_vm4, %v618_v13  ;;  %v616_v20 = vpop.permute.xlu0 %615  ;;  %v3925_v13 = vld [vmem:[#allocation22_spill] sm:$0xff] }
  0xde   : > { %708 = vst.msk [vmem:[#allocation2 + $0x20] sm:$0xff] %vm703_vm4, %v616_v20  ;;  %883 = vrot.lane.b32.xlu1 %v2590_v47, %s2339_s5  ;;  %v3926_v20 = vld [vmem:[#allocation23_spill] sm:$0xff] }
  0xdf   : > { %881 = vrot.lane.b32.xlu0 %v3920_v38, %s2339_s5 }
  0xe0   : > { %v622_v49 = vpop.permute.xlu1 %621 }
  0xe1   : > { %711 = vst.msk [vmem:[#allocation2 + $0x38] sm:$0xff] %vm703_vm4, %v622_v49  ;;  %v620_v15 = vpop.permute.xlu0 %619 }
  0xe2   : > { %710 = vst.msk [vmem:[#allocation2 + $0x30] sm:$0xff] %vm703_vm4, %v620_v15  ;;  %887 = vrot.lane.b32.xlu1 %v3921_v1, %s2339_s5 }
  0xe3   : > { %885 = vrot.lane.b32.xlu0 %v3922_v34, %s2339_s5 }
  0xe4   : > { %v626_v52 = vpop.permute.xlu1 %625 }
  0xe5   : > { %713 = vst.msk [vmem:[#allocation2 + $0x48] sm:$0xff] %vm703_vm4, %v626_v52  ;;  %v624_v2 = vpop.permute.xlu0 %623 }
  0xe6   : > { %712 = vst.msk [vmem:[#allocation2 + $0x40] sm:$0xff] %vm703_vm4, %v624_v2  ;;  %1017 = vrot.lane.b32.xlu1 %v2869_v5, %s2340_s6 }
  0xe7   : > { %1015 = vrot.lane.b32.xlu0 %v2874_v27, %s2340_s6 }
  0xe8   : > { %v630_v47 = vpop.permute.xlu1 %629 }
  0xe9   : > { %715 = vst.msk [vmem:[#allocation2 + $0x58] sm:$0xff] %vm703_vm4, %v630_v47  ;;  %v628_v37 = vpop.permute.xlu0 %627 }
  0xea   : > { %714 = vst.msk [vmem:[#allocation2 + $0x50] sm:$0xff] %vm703_vm4, %v628_v37  ;;  %1021 = vrot.lane.b32.xlu1 %v2882_v60, %s2340_s6 }
  0xeb   : > { %1019 = vrot.lane.b32.xlu0 %v2887_v36, %s2340_s6 }
  0xec   : > { %v634_v11 = vpop.permute.xlu1 %633 }
  0xed   : > { %717 = vst.msk [vmem:[#allocation2 + $0x68] sm:$0xff] %vm703_vm4, %v634_v11  ;;  %v632_v12 = vpop.permute.xlu0 %631  ;;  %v3927_v11 = vld [vmem:[#allocation24_spill] sm:$0xff] }
  0xee   : > { %716 = vst.msk [vmem:[#allocation2 + $0x60] sm:$0xff] %vm703_vm4, %v632_v12  ;;  %1148 = vrot.lane.b32.xlu1 %v2480_v19, %s2341_s7  ;;  %v3928_v12 = vld [vmem:[#allocation25_spill] sm:$0xff] }
  0xef   : > { %1146 = vrot.lane.b32.xlu0 %v2491_v23, %s2341_s7 }
  0xf0   : > { %v638_v5 = vpop.permute.xlu1 %637 }
  0xf1   : > { %719 = vst.msk [vmem:[#allocation2 + $0x78] sm:$0xff] %vm703_vm4, %v638_v5  ;;  %v636_v27 = vpop.permute.xlu0 %635 }
  0xf2   : > { %718 = vst.msk [vmem:[#allocation2 + $0x70] sm:$0xff] %vm703_vm4, %v636_v27  ;;  %1152 = vrot.lane.b32.xlu1 %v2494_v24, %s2341_s7  ;;  %v3923_v24 = vld [vmem:[#allocation20_spill] sm:$0xff] }
  0xf3   : > { %1150 = vrot.lane.b32.xlu0 %v2506_v28, %s2341_s7  ;;  %v3924_v28 = vld [vmem:[#allocation21_spill] sm:$0xff] }
  0xf4   : > { %v642_v16 = vpop.permute.xlu1 %641 }
  0xf5   : > { %721 = vst.msk [vmem:[#allocation2 + $0x88] sm:$0xff] %vm703_vm4, %v642_v16  ;;  %v640_v18 = vpop.permute.xlu0 %639 }
  0xf6   : > { %720 = vst.msk [vmem:[#allocation2 + $0x80] sm:$0xff] %vm703_vm4, %v640_v18  ;;  %1283 = vrot.lane.b32.xlu1 %v3921_v1, %s2342_s10 }
  0xf7   : > { %1281 = vrot.lane.b32.xlu0 %v3922_v34, %s2342_s10 }
  0xf8   : > { %v646_v19 = vpop.permute.xlu1 %645 }
  0xf9   : > { %723 = vst.msk [vmem:[#allocation2 + $0x98] sm:$0xff] %vm703_vm4, %v646_v19  ;;  %v644_v23 = vpop.permute.xlu0 %643 }
  0xfa   : > { %722 = vst.msk [vmem:[#allocation2 + $0x90] sm:$0xff] %vm703_vm4, %v644_v23  ;;  %1287 = vrot.lane.b32.xlu1 %v3923_v24, %s2342_s10 }
  0xfb   : > { %1285 = vrot.lane.b32.xlu0 %v3924_v28, %s2342_s10 }
  0xfc   : > { %v650_v43 = vpop.permute.xlu1 %649 }
  0xfd   : > { %725 = vst.msk [vmem:[#allocation2 + $0xa8] sm:$0xff] %vm703_vm4, %v650_v43  ;;  %v648_v33 = vpop.permute.xlu0 %647 }
  0xfe   : > { %724 = vst.msk [vmem:[#allocation2 + $0xa0] sm:$0xff] %vm703_vm4, %v648_v33  ;;  %1417 = vrot.lane.b32.xlu1 %v2882_v60, %s2343_s24  ;;  %v3930_v33 = vld [vmem:[#allocation26_spill] sm:$0xff] }
  0xff   : > { %1415 = vrot.lane.b32.xlu0 %v2887_v36, %s2343_s24 }
 0x100   : > { %v654_v38 = vpop.permute.xlu1 %653 }
 0x101   : > { %727 = vst.msk [vmem:[#allocation2 + $0xb8] sm:$0xff] %vm703_vm4, %v654_v38  ;;  %v652_v3 = vpop.permute.xlu0 %651  ;;  %v3931_v38 = vld [vmem:[#allocation27_spill] sm:$0xff] }
 0x102   : > { %726 = vst.msk [vmem:[#allocation2 + $0xb0] sm:$0xff] %vm703_vm4, %v652_v3  ;;  %1421 = vrot.lane.b32.xlu1 %v2895_v14, %s2343_s24 }
 0x103   : > { %1419 = vrot.lane.b32.xlu0 %v2900_v54, %s2343_s24 }
 0x104   : > { %v658_v8 = vpop.permute.xlu1 %657 }
 0x105   : > { %729 = vst.msk [vmem:[#allocation2 + $0xc8] sm:$0xff] %vm703_vm4, %v658_v8  ;;  %v656_v56 = vpop.permute.xlu0 %655 }
 0x106   : > { %728 = vst.msk [vmem:[#allocation2 + $0xc0] sm:$0xff] %vm703_vm4, %v656_v56  ;;  %760 = vrot.lane.b32.xlu1 %v2513_v29, %s2338_s4 }
 0x107   : > { %758 = vrot.lane.b32.xlu0 %v2516_v30, %s2338_s4 }
 0x108   : > { %v662_v60 = vpop.permute.xlu1 %661 }
 0x109   : > { %731 = vst.msk [vmem:[#allocation2 + $0xd8] sm:$0xff] %vm703_vm4, %v662_v60  ;;  %v660_v36 = vpop.permute.xlu0 %659 }
 0x10a   : > { %730 = vst.msk [vmem:[#allocation2 + $0xd0] sm:$0xff] %vm703_vm4, %v660_v36  ;;  %891 = vrot.lane.b32.xlu1 %v3923_v24, %s2339_s5  ;;  %v3929_v24 = vld [vmem:[#allocation9_spill] sm:$0xff] }
 0x10b   : > { %889 = vrot.lane.b32.xlu0 %v3924_v28, %s2339_s5 }
 0x10c   : > { %v666_v59 = vpop.permute.xlu1 %665 }
 0x10d   : > { %733 = vst.msk [vmem:[#allocation2 + $0xe8] sm:$0xff] %vm703_vm4, %v666_v59  ;;  %v664_v0 = vpop.permute.xlu0 %663 }
 0x10e   : > { %732 = vst.msk [vmem:[#allocation2 + $0xe0] sm:$0xff] %vm703_vm4, %v664_v0  ;;  %895 = vrot.lane.b32.xlu1 %v3925_v13, %s2339_s5  ;;  %v3932_v0 = vld [vmem:[#allocation10_spill] sm:$0xff] }
 0x10f   : > { %893 = vrot.lane.b32.xlu0 %v3926_v20, %s2339_s5 }
 0x110   : > { %v670_v49 = vpop.permute.xlu1 %669 }
 0x111   : > { %735 = vst.msk [vmem:[#allocation2 + $0xf8] sm:$0xff] %vm703_vm4, %v670_v49  ;;  %v668_v15 = vpop.permute.xlu0 %667 }
 0x112   : > { %734 = vst.msk [vmem:[#allocation2 + $0xf0] sm:$0xff] %vm703_vm4, %v668_v15  ;;  %1025 = vrot.lane.b32.xlu1 %v2895_v14, %s2340_s6 }
 0x113   : > { %1023 = vrot.lane.b32.xlu0 %v2900_v54, %s2340_s6 }
 0x114   : > { %v741_v1 = vpop.permute.xlu1 %740 }
 0x115   : > { %836 = vst.msk [vmem:[#allocation2 + $0x8] sm:$0xff] %vm834_vm6, %v741_v1  ;;  %v739_v34 = vpop.permute.xlu0 %738 }
 0x116   : > { %835 = vst.msk [vmem:[#allocation2] sm:$0xff] %vm834_vm6, %v739_v34  ;;  %1029 = vrot.lane.b32.xlu1 %v2908_v39, %s2340_s6 }
 0x117   : > { %1027 = vrot.lane.b32.xlu0 %v2913_v6, %s2340_s6 }
 0x118   : > { %v745_v52 = vpop.permute.xlu1 %744 }
 0x119   : > { %838 = vst.msk [vmem:[#allocation2 + $0x18] sm:$0xff] %vm834_vm6, %v745_v52  ;;  %v743_v14 = vpop.permute.xlu0 %742 }
 0x11a   : > { %837 = vst.msk [vmem:[#allocation2 + $0x10] sm:$0xff] %vm834_vm6, %v743_v14  ;;  %1156 = vrot.lane.b32.xlu1 %v2513_v29, %s2341_s7 }
 0x11b   : > { %1154 = vrot.lane.b32.xlu0 %v2516_v30, %s2341_s7 }
 0x11c   : > { %v749_v54 = vpop.permute.xlu1 %748 }
 0x11d   : > { %840 = vst.msk [vmem:[#allocation2 + $0x28] sm:$0xff] %vm834_vm6, %v749_v54  ;;  %v747_v2 = vpop.permute.xlu0 %746  ;;  %v3933_v54 = vld [vmem:[#allocation28_spill] sm:$0xff] }
 0x11e   : > { %839 = vst.msk [vmem:[#allocation2 + $0x20] sm:$0xff] %vm834_vm6, %v747_v2  ;;  %1160 = vrot.lane.b32.xlu1 %v2523_v31, %s2341_s7 }
 0x11f   : > { %1158 = vrot.lane.b32.xlu0 %v2526_v32, %s2341_s7 }
 0x120   : > { %v753_v47 = vpop.permute.xlu1 %752 }
 0x121   : > { %842 = vst.msk [vmem:[#allocation2 + $0x38] sm:$0xff] %vm834_vm6, %v753_v47  ;;  %v751_v37 = vpop.permute.xlu0 %750  ;;  %v3934_v47 = vld [vmem:[#allocation29_spill] sm:$0xff] }
 0x122   : > { %841 = vst.msk [vmem:[#allocation2 + $0x30] sm:$0xff] %vm834_vm6, %v751_v37  ;;  %1291 = vrot.lane.b32.xlu1 %v3925_v13, %s2342_s10 }
 0x123   : > { %1289 = vrot.lane.b32.xlu0 %v3926_v20, %s2342_s10 }
 0x124   : > { %v757_v29 = vpop.permute.xlu1 %756 }
 0x125   : > { %844 = vst.msk [vmem:[#allocation2 + $0x48] sm:$0xff] %vm834_vm6, %v757_v29  ;;  %v755_v30 = vpop.permute.xlu0 %754 }
 0x126   : > { %843 = vst.msk [vmem:[#allocation2 + $0x40] sm:$0xff] %vm834_vm6, %v755_v30  ;;  %1295 = vrot.lane.b32.xlu1 %v3927_v11, %s2342_s10 }
 0x127   : > { %1293 = vrot.lane.b32.xlu0 %v3928_v12, %s2342_s10 }
 0x128   : > { %v876_v5 = vpop.permute.xlu1 %875 }
 0x129   : > { %971 = vst.msk [vmem:[#allocation2 + $0x8] sm:$0xff] %vm969_vm7, %v876_v5  ;;  %v874_v27 = vpop.permute.xlu0 %873 }
 0x12a   : > { %970 = vst.msk [vmem:[#allocation2] sm:$0xff] %vm969_vm7, %v874_v27  ;;  %1425 = vrot.lane.b32.xlu1 %v2908_v39, %s2343_s24  ;;  %v3935_v27 = vld [vmem:[#allocation11_spill] sm:$0xff] }
 0x12b   : > { %1423 = vrot.lane.b32.xlu0 %v2913_v6, %s2343_s24 }
 0x12c   : > { %v880_v16 = vpop.permute.xlu1 %879 }
 0x12d   : > { %973 = vst.msk [vmem:[#allocation2 + $0x18] sm:$0xff] %vm969_vm7, %v880_v16  ;;  %v878_v18 = vpop.permute.xlu0 %877 }
 0x12e   : > { %972 = vst.msk [vmem:[#allocation2 + $0x10] sm:$0xff] %vm969_vm7, %v878_v18  ;;  %1429 = vrot.lane.b32.xlu1 %v2921_v61, %s2343_s24 }
 0x12f   : > { %1427 = vrot.lane.b32.xlu0 %v2926_v22, %s2343_s24 }
 0x130   : > { %v1010_v19 = vpop.permute.xlu1 %1009 }
 0x131   : > { %1105 = vst.msk [vmem:[#allocation2 + $0x8] sm:$0xff] %vm1103_vm8, %v1010_v19  ;;  %v1008_v39 = vpop.permute.xlu0 %1007 }
 0x132   : > { %1104 = vst.msk [vmem:[#allocation2] sm:$0xff] %vm1103_vm8, %v1008_v39  ;;  %764 = vrot.lane.b32.xlu1 %v2523_v31, %s2338_s4  ;;  %v3936_v39 = vld [vmem:[#allocation30_spill] sm:$0xff] }
 0x133   : > { %762 = vrot.lane.b32.xlu0 %v2526_v32, %s2338_s4 }
 0x134   : > { %v1014_v6 = vpop.permute.xlu1 %1013 }
 0x135   : > { %1107 = vst.msk [vmem:[#allocation2 + $0x18] sm:$0xff] %vm1103_vm8, %v1014_v6  ;;  %v1012_v23 = vpop.permute.xlu0 %1011  ;;  %v3937_v6 = vld [vmem:[#allocation31_spill] sm:$0xff] }
 0x136   : > { %1106 = vst.msk [vmem:[#allocation2 + $0x10] sm:$0xff] %vm1103_vm8, %v1012_v23  ;;  %768 = vrot.lane.b32.xlu1 %v3929_v24, %s2338_s4 }
 0x137   : > { %766 = vrot.lane.b32.xlu0 %v2553_v40, %s2338_s4 }
 0x138   : > { %v1141_v28 = vpop.permute.xlu1 %1140 }
 0x139   : > { %1236 = vst.msk [vmem:[#allocation2 + $0x8] sm:$0xff] %vm1234_vm9, %v1141_v28  ;;  %v1139_v31 = vpop.permute.xlu0 %1138 }
 0x13a   : > { %1235 = vst.msk [vmem:[#allocation2] sm:$0xff] %vm1234_vm9, %v1139_v31  ;;  %899 = vrot.lane.b32.xlu1 %v3927_v11, %s2339_s5 }
 0x13b   : > { %897 = vrot.lane.b32.xlu0 %v3928_v12, %s2339_s5 }
 0x13c   : > { %v1145_v32 = vpop.permute.xlu1 %1144 }
 0x13d   : > { %1238 = vst.msk [vmem:[#allocation2 + $0x18] sm:$0xff] %vm1234_vm9, %v1145_v32  ;;  %v1143_v43 = vpop.permute.xlu0 %1142 }
 0x13e   : > { %1237 = vst.msk [vmem:[#allocation2 + $0x10] sm:$0xff] %vm1234_vm9, %v1143_v43  ;;  %903 = vrot.lane.b32.xlu1 %v3930_v33, %s2339_s5 }
 0x13f   : > { %901 = vrot.lane.b32.xlu0 %v3931_v38, %s2339_s5 }
 0x140   : > { %v1276_v3 = vpop.permute.xlu1 %1275 }
 0x141   : > { %1371 = vst.msk [vmem:[#allocation2 + $0x8] sm:$0xff] %vm1369_vm10, %v1276_v3  ;;  %v1274_v8 = vpop.permute.xlu0 %1273 }
 0x142   : > { %1370 = vst.msk [vmem:[#allocation2] sm:$0xff] %vm1369_vm10, %v1274_v8  ;;  %1033 = vrot.lane.b32.xlu1 %v2921_v61, %s2340_s6 }
 0x143   : > { %1031 = vrot.lane.b32.xlu0 %v2926_v22, %s2340_s6 }
 0x144   : > { %v1280_v56 = vpop.permute.xlu1 %1279 }
 0x145   : > { %1373 = vst.msk [vmem:[#allocation2 + $0x18] sm:$0xff] %vm1369_vm10, %v1280_v56  ;;  %v1278_v60 = vpop.permute.xlu0 %1277 }
 0x146   : > { %1372 = vst.msk [vmem:[#allocation2 + $0x10] sm:$0xff] %vm1369_vm10, %v1278_v60  ;;  %1037 = vrot.lane.b32.xlu1 %v2934_v10, %s2340_s6  ;;  %v3938_v60 = vld [vmem:[#allocation12_spill] sm:$0xff] }
 0x147   : > { %1035 = vrot.lane.b32.xlu0 %v2939_v48, %s2340_s6 }
 0x148   : > { %v1410_v36 = vpop.permute.xlu1 %1409 }
 0x149   : > { %1505 = vst.msk [vmem:[#allocation2 + $0x8] sm:$0xff] %vm1503_vm11, %v1410_v36  ;;  %v1408_v61 = vpop.permute.xlu0 %1407 }
 0x14a   : > { %1504 = vst.msk [vmem:[#allocation2] sm:$0xff] %vm1503_vm11, %v1408_v61  ;;  %1164 = vrot.lane.b32.xlu1 %v3929_v24, %s2341_s7 }
 0x14b   : > { %1162 = vrot.lane.b32.xlu0 %v2553_v40, %s2341_s7 }
 0x14c   : > { %v1414_v22 = vpop.permute.xlu1 %1413 }
 0x14d   : > { %1507 = vst.msk [vmem:[#allocation2 + $0x18] sm:$0xff] %vm1503_vm11, %v1414_v22  ;;  %v1412_v59 = vpop.permute.xlu0 %1411 }
 0x14e   : > { %1506 = vst.msk [vmem:[#allocation2 + $0x10] sm:$0xff] %vm1503_vm11, %v1412_v59  ;;  %1168 = vrot.lane.b32.xlu1 %v3932_v0, %s2341_s7 }
 0x14f   : > { %1166 = vrot.lane.b32.xlu0 %v2559_v42, %s2341_s7 }
 0x150   : > { %v884_v13 = vpop.permute.xlu1 %883  ;;  %v1537_v20 = vld [vmem:[#allocation2 + $0x8] sm:$0xff] }
 0x151   : > { %975 = vst.msk [vmem:[#allocation2 + $0x28] sm:$0xff] %vm969_vm7, %v884_v13  ;;  %v882_v49 = vpop.permute.xlu0 %881  ;;  %v1536_v15 = vld [vmem:[#allocation2] sm:$0xff] }
 0x152   : > { %974 = vst.msk [vmem:[#allocation2 + $0x20] sm:$0xff] %vm969_vm7, %v882_v49  ;;  %1299 = vrot.lane.b32.xlu1 %v3930_v33, %s2342_s10  ;;  %v1568_v40 = vpack.c.bf16 %v1537_v20, %v1536_v15  ;;  %v3940_v13 = vld [vmem:[#allocation33_spill] sm:$0xff] }
 0x153   : > { %1297 = vrot.lane.b32.xlu0 %v3931_v38, %s2342_s10 }
 0x154   : > { %2143 = vmatprep.mubr.msk.bf16.mxu0 %vm1604_vm12, %v1568_v40  ;;  %v888_v1 = vpop.permute.xlu1 %887  ;;  %v1539_v34 = vld [vmem:[#allocation2 + $0x18] sm:$0xff] }
 0x155   : > { %977 = vst.msk [vmem:[#allocation2 + $0x38] sm:$0xff] %vm969_vm7, %v888_v1  ;;  %v886_v52 = vpop.permute.xlu0 %885  ;;  %v1538_v14 = vld [vmem:[#allocation2 + $0x10] sm:$0xff] }
 0x156   : > { %976 = vst.msk [vmem:[#allocation2 + $0x30] sm:$0xff] %vm969_vm7, %v886_v52  ;;  %1303 = vrot.lane.b32.xlu1 %v3933_v54, %s2342_s10  ;;  %v1569_v2 = vpack.c.bf16 %v1539_v34, %v1538_v14  ;;  %v3941_v52 = vld [vmem:[#allocation13_spill] sm:$0xff] }
 0x157   : > { %1301 = vrot.lane.b32.xlu0 %v3934_v47, %s2342_s10 }
 0x158   : > { %2144 = vmatmul.mubr.msk.bf16.vlgmr.msra.gmra.mrb[0].mxu0 %vm1604_vm12, %v1569_v2  ;;  %v1018_v37 = vpop.permute.xlu1 %1017 }
 0x159   : > { %1109 = vst.msk [vmem:[#allocation2 + $0x28] sm:$0xff] %vm1103_vm8, %v1018_v37  ;;  %v1016_v29 = vpop.permute.xlu0 %1015  ;;  %v3943_v37 = vld [vmem:[#allocation35_spill] sm:$0xff] }
 0x15a   : > { %1108 = vst.msk [vmem:[#allocation2 + $0x20] sm:$0xff] %vm1103_vm8, %v1016_v29  ;;  %1433 = vrot.lane.b32.xlu1 %v2934_v10, %s2343_s24 }
 0x15b   : > { %1431 = vrot.lane.b32.xlu0 %v2939_v48, %s2343_s24 }
 0x15c   : > { %v1022_v30 = vpop.permute.xlu1 %1021 }
 0x15d   : > { %1111 = vst.msk [vmem:[#allocation2 + $0x38] sm:$0xff] %vm1103_vm8, %v1022_v30  ;;  %v1020_v11 = vpop.permute.xlu0 %1019 }
 0x15e   : > { %1110 = vst.msk [vmem:[#allocation2 + $0x30] sm:$0xff] %vm1103_vm8, %v1020_v11  ;;  %1437 = vrot.lane.b32.xlu1 %v2947_v7, %s2343_s24 }
 0x15f   : > { %1435 = vrot.lane.b32.xlu0 %v2952_v9, %s2343_s24 }
 0x160   : > { %v1149_v12 = vpop.permute.xlu1 %1148 }
 0x161   : > { %1240 = vst.msk [vmem:[#allocation2 + $0x28] sm:$0xff] %vm1234_vm9, %v1149_v12  ;;  %v1147_v5 = vpop.permute.xlu0 %1146 }
 0x162   : > { %1239 = vst.msk [vmem:[#allocation2 + $0x20] sm:$0xff] %vm1234_vm9, %v1147_v5  ;;  %772 = vrot.lane.b32.xlu1 %v3932_v0, %s2338_s4  ;;  %v3939_v0 = vld [vmem:[#allocation32_spill] sm:$0xff] }
 0x163   : > { %770 = vrot.lane.b32.xlu0 %v2559_v42, %s2338_s4 }
 0x164   : > { %v1153_v10 = vpop.permute.xlu1 %1152 }
 0x165   : > { %1242 = vst.msk [vmem:[#allocation2 + $0x38] sm:$0xff] %vm1234_vm9, %v1153_v10  ;;  %v1151_v48 = vpop.permute.xlu0 %1150 }
 0x166   : > { %1241 = vst.msk [vmem:[#allocation2 + $0x30] sm:$0xff] %vm1234_vm9, %v1151_v48  ;;  %776 = vrot.lane.b32.xlu1 %v3935_v27, %s2338_s4 }
 0x167   : > { %774 = vrot.lane.b32.xlu0 %v2567_v44, %s2338_s4 }
 0x168   : > { %v1284_v16 = vpop.permute.xlu1 %1283 }
 0x169   : > { %1375 = vst.msk [vmem:[#allocation2 + $0x28] sm:$0xff] %vm1369_vm10, %v1284_v16  ;;  %v1282_v18 = vpop.permute.xlu0 %1281 }
 0x16a   : > { %1374 = vst.msk [vmem:[#allocation2 + $0x20] sm:$0xff] %vm1369_vm10, %v1282_v18  ;;  %907 = vrot.lane.b32.xlu1 %v3933_v54, %s2339_s5 }
 0x16b   : > { %905 = vrot.lane.b32.xlu0 %v3934_v47, %s2339_s5  ;;  %v3942_v47 = vld [vmem:[#allocation34_spill] sm:$0xff] }
 0x16c   : > { %v1288_v42 = vpop.permute.xlu1 %1287 }
 0x16d   : > { %1377 = vst.msk [vmem:[#allocation2 + $0x38] sm:$0xff] %vm1369_vm10, %v1288_v42  ;;  %v1286_v19 = vpop.permute.xlu0 %1285 }
 0x16e   : > { %1376 = vst.msk [vmem:[#allocation2 + $0x30] sm:$0xff] %vm1369_vm10, %v1286_v19  ;;  %911 = vrot.lane.b32.xlu1 %v3936_v39, %s2339_s5 }
 0x16f   : > { %909 = vrot.lane.b32.xlu0 %v3937_v6, %s2339_s5 }
 0x170   : > { %v1418_v23 = vpop.permute.xlu1 %1417 }
 0x171   : > { %1509 = vst.msk [vmem:[#allocation2 + $0x28] sm:$0xff] %vm1503_vm11, %v1418_v23  ;;  %v1416_v24 = vpop.permute.xlu0 %1415 }
 0x172   : > { %1508 = vst.msk [vmem:[#allocation2 + $0x20] sm:$0xff] %vm1503_vm11, %v1416_v24  ;;  %1041 = vrot.lane.b32.xlu1 %v2947_v7, %s2340_s6 }
 0x173   : > { %1039 = vrot.lane.b32.xlu0 %v2952_v9, %s2340_s6 }
 0x174   : > { %v1422_v28 = vpop.permute.xlu1 %1421 }
 0x175   : > { %1511 = vst.msk [vmem:[#allocation2 + $0x38] sm:$0xff] %vm1503_vm11, %v1422_v28  ;;  %v1420_v31 = vpop.permute.xlu0 %1419 }
 0x176   : > { %1510 = vst.msk [vmem:[#allocation2 + $0x30] sm:$0xff] %vm1503_vm11, %v1420_v31  ;;  %1045 = vrot.lane.b32.xlu1 %v2960_v26, %s2340_s6  ;;  %v3946_v31 = vld [vmem:[#allocation36_spill] sm:$0xff] }
 0x177   : > { %1043 = vrot.lane.b32.xlu0 %v2965_v35, %s2340_s6 }
 0x178   : > { %v761_v32 = vpop.permute.xlu1 %760  ;;  %v1541_v43 = vld [vmem:[#allocation2 + $0x28] sm:$0xff] }
 0x179   : > { %846 = vst.msk [vmem:[#allocation2 + $0x58] sm:$0xff] %vm834_vm6, %v761_v32  ;;  %v759_v7 = vpop.permute.xlu0 %758  ;;  %v1540_v33 = vld [vmem:[#allocation2 + $0x20] sm:$0xff] }
 0x17a   : > { %845 = vst.msk [vmem:[#allocation2 + $0x50] sm:$0xff] %vm834_vm6, %v759_v7  ;;  %1172 = vrot.lane.b32.xlu1 %v3935_v27, %s2341_s7  ;;  %v1570_v9 = vpack.c.bf16 %v1541_v43, %v1540_v33  ;;  %v3947_v32 = vld [vmem:[#allocation37_spill] sm:$0xff] }
 0x17b   : > { %1170 = vrot.lane.b32.xlu0 %v2567_v44, %s2341_s7 }
 0x17c   : > { %2147 = vmatprep.mubr.msk.bf16.mxu0 %vm1604_vm12, %v1570_v9  ;;  %v892_v38 = vpop.permute.xlu1 %891  ;;  %v1543_v3 = vld [vmem:[#allocation2 + $0x38] sm:$0xff] }
 0x17d   : > { %979 = vst.msk [vmem:[#allocation2 + $0x48] sm:$0xff] %vm969_vm7, %v892_v38  ;;  %v890_v8 = vpop.permute.xlu0 %889  ;;  %v1542_v56 = vld [vmem:[#allocation2 + $0x30] sm:$0xff] }
 0x17e   : > { %978 = vst.msk [vmem:[#allocation2 + $0x40] sm:$0xff] %vm969_vm7, %v890_v8  ;;  %1176 = vrot.lane.b32.xlu1 %v3938_v60, %s2341_s7  ;;  %v1571_v36 = vpack.c.bf16 %v1543_v3, %v1542_v56  ;;  %v3948_v8 = vld [vmem:[#allocation17_spill] sm:$0xff] }
 0x17f   : > { %1174 = vrot.lane.b32.xlu0 %v2581_v46, %s2341_s7 }
 0x180   : > { %2148 = vmatmul.mubr.msk.bf16.gmra.mrb[4].mxu0 %vm1604_vm12, %v1571_v36  ;;  %v896_v44 = vpop.permute.xlu1 %895 }
 0x181   : > { %981 = vst.msk [vmem:[#allocation2 + $0x58] sm:$0xff] %vm969_vm7, %v896_v44  ;;  %v894_v61 = vpop.permute.xlu0 %893 }
 0x182   : > { %980 = vst.msk [vmem:[#allocation2 + $0x50] sm:$0xff] %vm969_vm7, %v894_v61  ;;  %1307 = vrot.lane.b32.xlu1 %v3936_v39, %s2342_s10  ;;  %v3944_v39 = vld [vmem:[#allocation15_spill] sm:$0xff]  ;;  %v3949_v61 = vld [vmem:[#allocation38_spill] sm:$0xff] }
 0x183   : > { %1305 = vrot.lane.b32.xlu0 %v3937_v6, %s2342_s10  ;;  %v3945_v6 = vld [vmem:[#allocation16_spill] sm:$0xff] }
 0x184   : > { %v1026_v22 = vpop.permute.xlu1 %1025 }
 0x185   : > { %1113 = vst.msk [vmem:[#allocation2 + $0x48] sm:$0xff] %vm1103_vm8, %v1026_v22  ;;  %v1024_v59 = vpop.permute.xlu0 %1023  ;;  %v3950_v22 = vld [vmem:[#allocation39_spill] sm:$0xff] }
 0x186   : > { %1112 = vst.msk [vmem:[#allocation2 + $0x40] sm:$0xff] %vm1103_vm8, %v1024_v59  ;;  %1311 = vrot.lane.b32.xlu1 %v3939_v0, %s2342_s10 }
 0x187   : > { %1309 = vrot.lane.b32.xlu0 %v3940_v13, %s2342_s10 }
 0x188   : > { %v1030_v20 = vpop.permute.xlu1 %1029 }
 0x189   : > { %1115 = vst.msk [vmem:[#allocation2 + $0x58] sm:$0xff] %vm1103_vm8, %v1030_v20  ;;  %v1028_v49 = vpop.permute.xlu0 %1027 }
 0x18a   : > { %1114 = vst.msk [vmem:[#allocation2 + $0x50] sm:$0xff] %vm1103_vm8, %v1028_v49  ;;  %1441 = vrot.lane.b32.xlu1 %v2960_v26, %s2343_s24 }
 0x18b   : > { %1439 = vrot.lane.b32.xlu0 %v2965_v35, %s2343_s24 }
 0x18c   : > { %v1157_v15 = vpop.permute.xlu1 %1156 }
 0x18d   : > { %1244 = vst.msk [vmem:[#allocation2 + $0x48] sm:$0xff] %vm1234_vm9, %v1157_v15  ;;  %v1155_v40 = vpop.permute.xlu0 %1154 }
 0x18e   : > { %1243 = vst.msk [vmem:[#allocation2 + $0x40] sm:$0xff] %vm1234_vm9, %v1155_v40  ;;  %1445 = vrot.lane.b32.xlu1 %v2973_v4, %s2343_s24 }
 0x18f   : > { %1443 = vrot.lane.b32.xlu0 %v2978_v25, %s2343_s24 }
 0x190   : > { %v1161_v1 = vpop.permute.xlu1 %1160 }
 0x191   : > { %1246 = vst.msk [vmem:[#allocation2 + $0x58] sm:$0xff] %vm1234_vm9, %v1161_v1  ;;  %v1159_v34 = vpop.permute.xlu0 %1158 }
 0x192   : > { %1245 = vst.msk [vmem:[#allocation2 + $0x50] sm:$0xff] %vm1234_vm9, %v1159_v34  ;;  %780 = vrot.lane.b32.xlu1 %v3938_v60, %s2338_s4 }
 0x193   : > { %778 = vrot.lane.b32.xlu0 %v2581_v46, %s2338_s4 }
 0x194   : > { %v1292_v26 = vpop.permute.xlu1 %1291 }
 0x195   : > { %1379 = vst.msk [vmem:[#allocation2 + $0x48] sm:$0xff] %vm1369_vm10, %v1292_v26  ;;  %v1290_v35 = vpop.permute.xlu0 %1289 }
 0x196   : > { %1378 = vst.msk [vmem:[#allocation2 + $0x40] sm:$0xff] %vm1369_vm10, %v1290_v35  ;;  %784 = vrot.lane.b32.xlu1 %v3941_v52, %s2338_s4 }
 0x197   : > { %782 = vrot.lane.b32.xlu0 %v2598_v51, %s2338_s4 }
 0x198   : > { %v1296_v14 = vpop.permute.xlu1 %1295 }
 0x199   : > { %1381 = vst.msk [vmem:[#allocation2 + $0x58] sm:$0xff] %vm1369_vm10, %v1296_v14  ;;  %v1294_v54 = vpop.permute.xlu0 %1293 }
 0x19a   : > { %1380 = vst.msk [vmem:[#allocation2 + $0x50] sm:$0xff] %vm1369_vm10, %v1294_v54  ;;  %915 = vrot.lane.b32.xlu1 %v3939_v0, %s2339_s5 }
 0x19b   : > { %913 = vrot.lane.b32.xlu0 %v3940_v13, %s2339_s5 }
 0x19c   : > { %v1426_v46 = vpop.permute.xlu1 %1425 }
 0x19d   : > { %1513 = vst.msk [vmem:[#allocation2 + $0x48] sm:$0xff] %vm1503_vm11, %v1426_v46  ;;  %v1424_v2 = vpop.permute.xlu0 %1423 }
 0x19e   : > { %1512 = vst.msk [vmem:[#allocation2 + $0x40] sm:$0xff] %vm1503_vm11, %v1424_v2  ;;  %919 = vrot.lane.b32.xlu1 %v3942_v47, %s2339_s5  ;;  %v3951_v2 = vld [vmem:[#allocation40_spill] sm:$0xff] }
 0x19f   : > { %917 = vrot.lane.b32.xlu0 %v3943_v37, %s2339_s5 }
 0x1a0   : > { %v1430_v29 = vpop.permute.xlu1 %1429 }
 0x1a1   : > { %1515 = vst.msk [vmem:[#allocation2 + $0x58] sm:$0xff] %vm1503_vm11, %v1430_v29  ;;  %v1428_v30 = vpop.permute.xlu0 %1427 }
 0x1a2   : > { %1514 = vst.msk [vmem:[#allocation2 + $0x50] sm:$0xff] %vm1503_vm11, %v1428_v30  ;;  %1049 = vrot.lane.b32.xlu1 %v2973_v4, %s2340_s6 }
 0x1a3   : > { %1047 = vrot.lane.b32.xlu0 %v2978_v25, %s2340_s6 }
 0x1a4   : > { %v765_v11 = vpop.permute.xlu1 %764  ;;  %v1545_v12 = vld [vmem:[#allocation2 + $0x48] sm:$0xff] }
 0x1a5   : > { %848 = vst.msk [vmem:[#allocation2 + $0x68] sm:$0xff] %vm834_vm6, %v765_v11  ;;  %v763_v5 = vpop.permute.xlu0 %762  ;;  %v1544_v10 = vld [vmem:[#allocation2 + $0x40] sm:$0xff] }
 0x1a6   : > { %847 = vst.msk [vmem:[#allocation2 + $0x60] sm:$0xff] %vm834_vm6, %v763_v5  ;;  %1053 = vrot.lane.b32.xlu1 %v2986_v53, %s2340_s6  ;;  %v1572_v48 = vpack.c.bf16 %v1545_v12, %v1544_v10  ;;  %v229_v10 = vld [vmem:[%s2420_s28 + $0x180] sm:$0xff] }
 0x1a7   : > { %1051 = vrot.lane.b32.xlu0 %v2991_v17, %s2340_s6 }
 0x1a8   : > { %2151 = vmatprep.mubr.msk.bf16.mxu0 %vm1604_vm12, %v1572_v48  ;;  %v769_v4 = vpop.permute.xlu1 %768  ;;  %v1547_v27 = vld [vmem:[#allocation2 + $0x58] sm:$0xff]  ;;  %v231_v48 = vld [vmem:[%s2420_s28 + $0x190] sm:$0x3] }
 0x1a9   : > { %850 = vst.msk [vmem:[#allocation2 + $0x78] sm:$0xff] %vm834_vm6, %v769_v4  ;;  %v767_v25 = vpop.permute.xlu0 %766  ;;  %v1546_v16 = vld [vmem:[#allocation2 + $0x50] sm:$0xff] }
 0x1aa   : > { %849 = vst.msk [vmem:[#allocation2 + $0x70] sm:$0xff] %vm834_vm6, %v767_v25  ;;  %1180 = vrot.lane.b32.xlu1 %v3941_v52, %s2341_s7  ;;  %v1573_v18 = vpack.c.bf16 %v1547_v27, %v1546_v16  ;;  %v871_v25 = vrot.slane %v231_v48, 1  ;;  %v868_v16 = vrot.slane %v229_v10, 1 }
 0x1ab   : > { %1178 = vrot.lane.b32.xlu0 %v2598_v51, %s2341_s7 }
 0x1ac   : > { %2152 = vmatmul.mubr.msk.bf16.gmra.mrb[8].mxu0 %vm1604_vm12, %v1573_v18  ;;  %v900_v42 = vpop.permute.xlu1 %899 }
 0x1ad   : > { %983 = vst.msk [vmem:[#allocation2 + $0x68] sm:$0xff] %vm969_vm7, %v900_v42  ;;  %v898_v19 = vpop.permute.xlu0 %897 }
 0x1ae   : > { %982 = vst.msk [vmem:[#allocation2 + $0x60] sm:$0xff] %vm969_vm7, %v898_v19  ;;  %1184 = vrot.lane.b32.xlu1 %v3944_v39, %s2341_s7 }
 0x1af   : > { %1182 = vrot.lane.b32.xlu0 %v3945_v6, %s2341_s7 }
 0x1b0   : > { %v904_v23 = vpop.permute.xlu1 %903 }
 0x1b1   : > { %985 = vst.msk [vmem:[#allocation2 + $0x78] sm:$0xff] %vm969_vm7, %v904_v23  ;;  %v902_v24 = vpop.permute.xlu0 %901  ;;  %v1005_v23 = vrot.slane %v231_v48, 2 }
 0x1b2   : > { %984 = vst.msk [vmem:[#allocation2 + $0x70] sm:$0xff] %vm969_vm7, %v902_v24  ;;  %1315 = vrot.lane.b32.xlu1 %v3942_v47, %s2342_s10  ;;  %v3952_v47 = vld [vmem:[#allocation41_spill] sm:$0xff]  ;;  %v1002_v24 = vrot.slane %v229_v10, 2 }
 0x1b3   : > { %1313 = vrot.lane.b32.xlu0 %v3943_v37, %s2342_s10 }
 0x1b4   : > { %v1034_v51 = vpop.permute.xlu1 %1033 }
 0x1b5   : > { %1117 = vst.msk [vmem:[#allocation2 + $0x68] sm:$0xff] %vm1103_vm8, %v1034_v51  ;;  %v1032_v28 = vpop.permute.xlu0 %1031 }
 0x1b6   : > { %1116 = vst.msk [vmem:[#allocation2 + $0x60] sm:$0xff] %vm1103_vm8, %v1032_v28  ;;  %1319 = vrot.lane.b32.xlu1 %v3946_v31, %s2342_s10 }
 0x1b7   : > { %1317 = vrot.lane.b32.xlu0 %v3947_v32, %s2342_s10 }
 0x1b8   : > { %v1038_v43 = vpop.permute.xlu1 %1037 }
 0x1b9   : > { %1119 = vst.msk [vmem:[#allocation2 + $0x78] sm:$0xff] %vm1103_vm8, %v1038_v43  ;;  %v1036_v7 = vpop.permute.xlu0 %1035 }
 0x1ba   : > { %1118 = vst.msk [vmem:[#allocation2 + $0x70] sm:$0xff] %vm1103_vm8, %v1036_v7  ;;  %1449 = vrot.lane.b32.xlu1 %v2986_v53, %s2343_s24 }
 0x1bb   : > { %1447 = vrot.lane.b32.xlu0 %v2991_v17, %s2343_s24 }
 0x1bc   : > { %v1165_v33 = vpop.permute.xlu1 %1164 }
 0x1bd   : > { %1248 = vst.msk [vmem:[#allocation2 + $0x68] sm:$0xff] %vm1234_vm9, %v1165_v33  ;;  %v1163_v9 = vpop.permute.xlu0 %1162 }
 0x1be   : > { %1247 = vst.msk [vmem:[#allocation2 + $0x60] sm:$0xff] %vm1234_vm9, %v1163_v9  ;;  %1453 = vrot.lane.b32.xlu1 %v2999_v21, %s2343_s24 }
 0x1bf   : > { %1451 = vrot.lane.b32.xlu0 %v3004_v41, %s2343_s24 }
 0x1c0   : > { %v1169_v38 = vpop.permute.xlu1 %1168 }
 0x1c1   : > { %1250 = vst.msk [vmem:[#allocation2 + $0x78] sm:$0xff] %vm1234_vm9, %v1169_v38  ;;  %v1167_v3 = vpop.permute.xlu0 %1166 }
 0x1c2   : > { %1249 = vst.msk [vmem:[#allocation2 + $0x70] sm:$0xff] %vm1234_vm9, %v1167_v3  ;;  %788 = vrot.lane.b32.xlu1 %v3944_v39, %s2338_s4 }
 0x1c3   : > { %786 = vrot.lane.b32.xlu0 %v3945_v6, %s2338_s4 }
 0x1c4   : > { %v1300_v53 = vpop.permute.xlu1 %1299 }
 0x1c5   : > { %1383 = vst.msk [vmem:[#allocation2 + $0x68] sm:$0xff] %vm1369_vm10, %v1300_v53  ;;  %v1298_v17 = vpop.permute.xlu0 %1297 }
 0x1c6   : > { %1382 = vst.msk [vmem:[#allocation2 + $0x60] sm:$0xff] %vm1369_vm10, %v1298_v17  ;;  %792 = vrot.lane.b32.xlu1 %v2626_v57, %s2338_s4 }
 0x1c7   : > { %790 = vrot.lane.b32.xlu0 %v3948_v8, %s2338_s4 }
 0x1c8   : > { %v1304_v56 = vpop.permute.xlu1 %1303 }
 0x1c9   : > { %1385 = vst.msk [vmem:[#allocation2 + $0x78] sm:$0xff] %vm1369_vm10, %v1304_v56  ;;  %v1302_v60 = vpop.permute.xlu0 %1301 }
 0x1ca   : > { %1384 = vst.msk [vmem:[#allocation2 + $0x70] sm:$0xff] %vm1369_vm10, %v1302_v60  ;;  %923 = vrot.lane.b32.xlu1 %v3946_v31, %s2339_s5  ;;  %v232_v60 = vld [vmem:[%s2420_s28 + $0x198] sm:$0xff] }
 0x1cb   : > { %921 = vrot.lane.b32.xlu0 %v3947_v32, %s2339_s5 }
 0x1cc   : > { %v1434_v36 = vpop.permute.xlu1 %1433 }
 0x1cd   : > { %1517 = vst.msk [vmem:[#allocation2 + $0x68] sm:$0xff] %vm1503_vm11, %v1434_v36  ;;  %v1432_v44 = vpop.permute.xlu0 %1431  ;;  %v234_v36 = vld [vmem:[%s2420_s28 + $0x1a8] sm:$0x3] }
 0x1ce   : > { %1516 = vst.msk [vmem:[#allocation2 + $0x60] sm:$0xff] %vm1503_vm11, %v1432_v44  ;;  %927 = vrot.lane.b32.xlu1 %v3949_v61, %s2339_s5 }
 0x1cf   : > { %925 = vrot.lane.b32.xlu0 %v3950_v22, %s2339_s5 }
 0x1d0   : > { %v1438_v59 = vpop.permute.xlu1 %1437 }
 0x1d1   : > { %1519 = vst.msk [vmem:[#allocation2 + $0x78] sm:$0xff] %vm1503_vm11, %v1438_v59  ;;  %v1436_v0 = vpop.permute.xlu0 %1435  ;;  %v1268_v59 = vrot.slane %v232_v60, 1 }
 0x1d2   : > { %1518 = vst.msk [vmem:[#allocation2 + $0x70] sm:$0xff] %vm1503_vm11, %v1436_v0  ;;  %1057 = vrot.lane.b32.xlu1 %v2999_v21, %s2340_s6 }
 0x1d3   : > { %1055 = vrot.lane.b32.xlu0 %v3004_v41, %s2340_s6 }
 0x1d4   : > { %v773_v13 = vpop.permute.xlu1 %772  ;;  %v1549_v20 = vld [vmem:[#allocation2 + $0x68] sm:$0xff] }
 0x1d5   : > { %852 = vst.msk [vmem:[#allocation2 + $0x88] sm:$0xff] %vm834_vm6, %v773_v13  ;;  %v771_v49 = vpop.permute.xlu0 %770  ;;  %v1548_v15 = vld [vmem:[#allocation2 + $0x60] sm:$0xff] }
 0x1d6   : > { %851 = vst.msk [vmem:[#allocation2 + $0x80] sm:$0xff] %vm834_vm6, %v771_v49  ;;  %1061 = vrot.lane.b32.xlu1 %v3014_v50, %s2340_s6  ;;  %v1574_v40 = vpack.c.bf16 %v1549_v20, %v1548_v15 }
 0x1d7   : > { %1059 = vrot.lane.b32.xlu0 %v3019_v58, %s2340_s6 }
 0x1d8   : > { %2155 = vmatprep.mubr.msk.bf16.mxu0 %vm1604_vm12, %v1574_v40  ;;  %v777_v21 = vpop.permute.xlu1 %776  ;;  %v1551_v1 = vld [vmem:[#allocation2 + $0x78] sm:$0xff] }
 0x1d9   : > { %854 = vst.msk [vmem:[#allocation2 + $0x98] sm:$0xff] %vm834_vm6, %v777_v21  ;;  %v775_v41 = vpop.permute.xlu0 %774  ;;  %v1550_v34 = vld [vmem:[#allocation2 + $0x70] sm:$0xff] }
 0x1da   : > { %853 = vst.msk [vmem:[#allocation2 + $0x90] sm:$0xff] %vm834_vm6, %v775_v41  ;;  %1188 = vrot.lane.b32.xlu1 %v2626_v57, %s2341_s7  ;;  %v1575_v26 = vpack.c.bf16 %v1551_v1, %v1550_v34  ;;  %v1405_v1 = vrot.slane %v234_v36, 2  ;;  %v1402_v41 = vrot.slane %v232_v60, 2 }
 0x1db   : > { %1186 = vrot.lane.b32.xlu0 %v3948_v8, %s2341_s7  ;;  %v233_v8 = vld [vmem:[%s2420_s28 + $0x1a0] sm:$0xff] }
 0x1dc   : > { %2156 = vmatmul.mubr.msk.bf16.gmra.mrb[12].mxu0 %vm1604_vm12, %v1575_v26  ;;  %v908_v35 = vpop.permute.xlu1 %907  ;;  %v1403_v21 = vrot.slane %v233_v8, 2 }
 0x1dd   : > { %987 = vst.msk [vmem:[#allocation2 + $0x88] sm:$0xff] %vm969_vm7, %v908_v35  ;;  %v906_v52 = vpop.permute.xlu0 %905 }
 0x1de   : > { %986 = vst.msk [vmem:[#allocation2 + $0x80] sm:$0xff] %vm969_vm7, %v906_v52  ;;  %1192 = vrot.lane.b32.xlu1 %v2641_v62, %s2341_s7  ;;  %v1406_v35 = vsel %vm526_vm2, %v1403_v21, %v1405_v1 }
 0x1df   : > { %1190 = vrot.lane.b32.xlu0 %v2644_v63, %s2341_s7 }
 0x1e0   : > { %v912_v14 = vpop.permute.xlu1 %911 }
 0x1e1   : > { %989 = vst.msk [vmem:[#allocation2 + $0x98] sm:$0xff] %vm969_vm7, %v912_v14  ;;  %v910_v57 = vpop.permute.xlu0 %909  ;;  %v1404_v14 = vsel %vm526_vm2, %v1402_v41, %v1403_v21 }
 0x1e2   : > { %988 = vst.msk [vmem:[#allocation2 + $0x90] sm:$0xff] %vm969_vm7, %v910_v57  ;;  %1323 = vrot.lane.b32.xlu1 %v3949_v61, %s2342_s10  ;;  %v1269_v61 = vrot.slane %v233_v8, 1 }
 0x1e3   : > { %1321 = vrot.lane.b32.xlu0 %v3950_v22, %s2342_s10  ;;  %v1271_v22 = vrot.slane %v234_v36, 1 }
 0x1e4   : > { %v1042_v54 = vpop.permute.xlu1 %1041  ;;  %v1270_v15 = vsel %vm316_vm1, %v1268_v59, %v1269_v61 }
 0x1e5   : > { %1121 = vst.msk [vmem:[#allocation2 + $0x88] sm:$0xff] %vm1103_vm8, %v1042_v54  ;;  %v1040_v46 = vpop.permute.xlu0 %1039  ;;  %v1272_v20 = vsel %vm316_vm1, %v1269_v61, %v1271_v22 }
 0x1e6   : > { %1120 = vst.msk [vmem:[#allocation2 + $0x80] sm:$0xff] %vm1103_vm8, %v1040_v46  ;;  %1327 = vrot.lane.b32.xlu1 %v3951_v2, %s2342_s10 }
 0x1e7   : > { %1325 = vrot.lane.b32.xlu0 %v3952_v47, %s2342_s10 }
 0x1e8   : > { %v1046_v37 = vpop.permute.xlu1 %1045 }
 0x1e9   : > { %1123 = vst.msk [vmem:[#allocation2 + $0x98] sm:$0xff] %vm1103_vm8, %v1046_v37  ;;  %v1044_v29 = vpop.permute.xlu0 %1043 }
 0x1ea   : > { %1122 = vst.msk [vmem:[#allocation2 + $0x90] sm:$0xff] %vm1103_vm8, %v1044_v29  ;;  %1457 = vrot.lane.b32.xlu1 %v3014_v50, %s2343_s24 }
 0x1eb   : > { %1455 = vrot.lane.b32.xlu0 %v3019_v58, %s2343_s24  ;;  %v230_v58 = vld [vmem:[%s2420_s28 + $0x188] sm:$0xff]  ;;  %s2117_s28 = sshll.u32 %s2388_s16, 12 }
 0x1ec   : > { %v1173_v30 = vpop.permute.xlu1 %1172  ;;  %v869_v27 = vrot.slane %v230_v58, 1  ;;  %v1003_v6 = vrot.slane %v230_v58, 2 }
 0x1ed   : > { %1252 = vst.msk [vmem:[#allocation2 + $0x88] sm:$0xff] %vm1234_vm9, %v1173_v30  ;;  %v1171_v11 = vpop.permute.xlu0 %1170 }
 0x1ee   : > { %1251 = vst.msk [vmem:[#allocation2 + $0x80] sm:$0xff] %vm1234_vm9, %v1171_v11  ;;  %1461 = vrot.lane.b32.xlu1 %v3029_v55, %s2343_s24  ;;  %v872_v18 = vsel %vm316_vm1, %v869_v27, %v871_v25  ;;  %v870_v19 = vsel %vm316_vm1, %v868_v16, %v869_v27  ;;  %v1006_v31 = vsel %vm526_vm2, %v1003_v6, %v1005_v23 }
 0x1ef   : > { %1459 = vrot.lane.b32.xlu0 %v3032_v45, %s2343_s24  ;;  %v1004_v43 = vsel %vm526_vm2, %v1002_v24, %v1003_v6 }
 0x1f0   : > { %v1177_v12 = vpop.permute.xlu1 %1176 }
 0x1f1   : > { %1254 = vst.msk [vmem:[#allocation2 + $0x98] sm:$0xff] %vm1234_vm9, %v1177_v12  ;;  %v1175_v50 = vpop.permute.xlu0 %1174 }
 0x1f2   : > { %1253 = vst.msk [vmem:[#allocation2 + $0x90] sm:$0xff] %vm1234_vm9, %v1175_v50  ;;  %796 = vrot.lane.b32.xlu1 %v2641_v62, %s2338_s4 }
 0x1f3   : > { %794 = vrot.lane.b32.xlu0 %v2644_v63, %s2338_s4 }
 0x1f4   : > { %v1308_v5 = vpop.permute.xlu1 %1307 }
 0x1f5   : > { %1387 = vst.msk [vmem:[#allocation2 + $0x88] sm:$0xff] %vm1369_vm10, %v1308_v5  ;;  %v1306_v4 = vpop.permute.xlu0 %1305 }
 0x1f6   : > { %1386 = vst.msk [vmem:[#allocation2 + $0x80] sm:$0xff] %vm1369_vm10, %v1306_v4  ;;  %800 = vrot.lane.b32.xlu1 %v230_v58, %s2338_s4 }
 0x1f7   : > { %798 = vrot.lane.b32.xlu0 %v229_v10, %s2338_s4 }
 0x1f8   : > { %v1312_v62 = vpop.permute.xlu1 %1311 }
 0x1f9   : > { %1389 = vst.msk [vmem:[#allocation2 + $0x98] sm:$0xff] %vm1369_vm10, %v1312_v62  ;;  %v1310_v63 = vpop.permute.xlu0 %1309 }
 0x1fa   : > { %1388 = vst.msk [vmem:[#allocation2 + $0x90] sm:$0xff] %vm1369_vm10, %v1310_v63  ;;  %931 = vrot.lane.b32.xlu1 %v3951_v2, %s2339_s5 }
 0x1fb   : > { %929 = vrot.lane.b32.xlu0 %v3952_v47, %s2339_s5 }
 0x1fc   : > { %v1442_v42 = vpop.permute.xlu1 %1441 }
 0x1fd   : > { %1521 = vst.msk [vmem:[#allocation2 + $0x88] sm:$0xff] %vm1503_vm11, %v1442_v42  ;;  %v1440_v39 = vpop.permute.xlu0 %1439 }
 0x1fe   : > { %1520 = vst.msk [vmem:[#allocation2 + $0x80] sm:$0xff] %vm1503_vm11, %v1440_v39  ;;  %935 = vrot.lane.b32.xlu1 %v872_v18, %s2339_s5 }
 0x1ff   : > { %933 = vrot.lane.b32.xlu0 %v870_v19, %s2339_s5 }
 0x200   : > { %v1446_v51 = vpop.permute.xlu1 %1445 }
 0x201   : > { %1523 = vst.msk [vmem:[#allocation2 + $0x98] sm:$0xff] %vm1503_vm11, %v1446_v51  ;;  %v1444_v28 = vpop.permute.xlu0 %1443 }
 0x202   : > { %1522 = vst.msk [vmem:[#allocation2 + $0x90] sm:$0xff] %vm1503_vm11, %v1444_v28  ;;  %1065 = vrot.lane.b32.xlu1 %v3029_v55, %s2340_s6 }
 0x203   : > { %1063 = vrot.lane.b32.xlu0 %v3032_v45, %s2340_s6 }
 0x204   : > { %v781_v32 = vpop.permute.xlu1 %780  ;;  %v1553_v7 = vld [vmem:[#allocation2 + $0x88] sm:$0xff] }
 0x205   : > { %856 = vst.msk [vmem:[#allocation2 + $0xa8] sm:$0xff] %vm834_vm6, %v781_v32  ;;  %v779_v33 = vpop.permute.xlu0 %778  ;;  %v1552_v9 = vld [vmem:[#allocation2 + $0x80] sm:$0xff] }
 0x206   : > { %855 = vst.msk [vmem:[#allocation2 + $0xa0] sm:$0xff] %vm834_vm6, %v779_v33  ;;  %1069 = vrot.lane.b32.xlu1 %v1006_v31, %s2340_s6  ;;  %v1576_v55 = vpack.c.bf16 %v1553_v7, %v1552_v9 }
 0x207   : > { %1067 = vrot.lane.b32.xlu0 %v1004_v43, %s2340_s6  ;;  %s3735_s6 = scalar_lea.hbm %s3817_s2, %s2117_s28 }
 0x208   : > { %2159 = vmatprep.mubr.msk.bf16.mxu1 %vm1604_vm12, %v1576_v55  ;;  %v785_v45 = vpop.permute.xlu1 %784  ;;  %v1555_v38 = vld [vmem:[#allocation2 + $0x98] sm:$0xff] }
 0x209   : > { %858 = vst.msk [vmem:[#allocation2 + $0xb8] sm:$0xff] %vm834_vm6, %v785_v45  ;;  %v783_v3 = vpop.permute.xlu0 %782  ;;  %v1554_v53 = vld [vmem:[#allocation2 + $0x90] sm:$0xff] }
 0x20a   : > { %857 = vst.msk [vmem:[#allocation2 + $0xb0] sm:$0xff] %vm834_vm6, %v783_v3  ;;  %1196 = vrot.lane.b32.xlu1 %v230_v58, %s2341_s7  ;;  %v1577_v17 = vpack.c.bf16 %v1555_v38, %v1554_v53 }
 0x20b   : > { %1194 = vrot.lane.b32.xlu0 %v229_v10, %s2341_s7 }
 0x20c   : > { %2160 = vmatmul.mubr.msk.bf16.vlgmr.msra.gmra.mrb[0].mxu1 %vm1604_vm12, %v1577_v17  ;;  %v916_v56 = vpop.permute.xlu1 %915 }
 0x20d   : > { %991 = vst.msk [vmem:[#allocation2 + $0xa8] sm:$0xff] %vm969_vm7, %v916_v56  ;;  %v914_v44 = vpop.permute.xlu0 %913 }
 0x20e   : > { %990 = vst.msk [vmem:[#allocation2 + $0xa0] sm:$0xff] %vm969_vm7, %v914_v44  ;;  %1200 = vrot.lane.b32.xlu1 %v233_v8, %s2341_s7 }
 0x20f   : > { %1198 = vrot.lane.b32.xlu0 %v232_v60, %s2341_s7  ;;  %s1959_s7 = scalar_lea.sflag [#allocation4], %s3634_s25 }
 0x210   : > { %v920_v0 = vpop.permute.xlu1 %919 }
 0x211   : > { %993 = vst.msk [vmem:[#allocation2 + $0xb8] sm:$0xff] %vm969_vm7, %v920_v0  ;;  %v918_v13 = vpop.permute.xlu0 %917 }
 0x212   : > { %992 = vst.msk [vmem:[#allocation2 + $0xb0] sm:$0xff] %vm969_vm7, %v918_v13  ;;  %1331 = vrot.lane.b32.xlu1 %v872_v18, %s2342_s10 }
 0x213   : > { %1329 = vrot.lane.b32.xlu0 %v870_v19, %s2342_s10 }
 0x214   : > { %v1050_v49 = vpop.permute.xlu1 %1049 }
 0x215   : > { %1125 = vst.msk [vmem:[#allocation2 + $0xa8] sm:$0xff] %vm1103_vm8, %v1050_v49  ;;  %v1048_v40 = vpop.permute.xlu0 %1047 }
 0x216   : > { %1124 = vst.msk [vmem:[#allocation2 + $0xa0] sm:$0xff] %vm1103_vm8, %v1048_v40  ;;  %1335 = vrot.lane.b32.xlu1 %v1272_v20, %s2342_s10 }
 0x217   : > { %1333 = vrot.lane.b32.xlu0 %v1270_v15, %s2342_s10  ;;  %s2244_s10 = sshll.u32 %s2344_s9, 4  ;;  %s2245_s10 = int_to_ptr.vmem [resolvable:$false] %s2244_s10 }
 0x218   : > { %v1054_v34 = vpop.permute.xlu1 %1053  ;;  %s2246_s11 = scalar_lea.vmem %s2245_s10, 8192  ;;  %p2247_p0 = scmp.lt.s32.totalorder %s3738_s29, %s2245_s10 }
 0x219   : > { %1127 = vst.msk [vmem:[#allocation2 + $0xb8] sm:$0xff] %vm1103_vm8, %v1054_v34  ;;  %v1052_v26 = vpop.permute.xlu0 %1051  ;;  %p2248_p1 = scmp.lt.s32.totalorder %s2246_s11, %s2240_s8 }
 0x21a   : > { %1126 = vst.msk [vmem:[#allocation2 + $0xb0] sm:$0xff] %vm1103_vm8, %v1052_v26  ;;  %1465 = vrot.lane.b32.xlu1 %v1006_v31, %s2343_s24 }
 0x21b   : > { %1463 = vrot.lane.b32.xlu0 %v1004_v43, %s2343_s24  ;;  %p2249_p2 = por %p2248_p1, %p2247_p0 }
 0x21c   : > { %v1181_v52 = vpop.permute.xlu1 %1180 }
 0x21d   : > { %1256 = vst.msk [vmem:[#allocation2 + $0xa8] sm:$0xff] %vm1234_vm9, %v1181_v52  ;;  %v1179_v57 = vpop.permute.xlu0 %1178  ;;  %p2250_p3 = pnand %p2249_p2, %p2243_p13 }
 0x21e   : > { %1255 = vst.msk [vmem:[#allocation2 + $0xa0] sm:$0xff] %vm1234_vm9, %v1179_v57  ;;  %1469 = vrot.lane.b32.xlu1 %v1406_v35, %s2343_s24 }
 0x21f   : > { %1467 = vrot.lane.b32.xlu0 %v1404_v14, %s2343_s24 }
 0x220   : > { %v1185_v54 = vpop.permute.xlu1 %1184 }
 0x221   : > { %1258 = vst.msk [vmem:[#allocation2 + $0xb8] sm:$0xff] %vm1234_vm9, %v1185_v54  ;;  %v1183_v46 = vpop.permute.xlu0 %1182 }
 0x222   : > { %1257 = vst.msk [vmem:[#allocation2 + $0xb0] sm:$0xff] %vm1234_vm9, %v1183_v46 }
 0x224   : > { %v1316_v2 = vpop.permute.xlu1 %1315 }
 0x225   : > { %1391 = vst.msk [vmem:[#allocation2 + $0xa8] sm:$0xff] %vm1369_vm10, %v1316_v2  ;;  %v1314_v47 = vpop.permute.xlu0 %1313 }
 0x226   : > { %1390 = vst.msk [vmem:[#allocation2 + $0xa0] sm:$0xff] %vm1369_vm10, %v1314_v47 }
 0x228   : > { %v1320_v37 = vpop.permute.xlu1 %1319 }
 0x229   : > { %1393 = vst.msk [vmem:[#allocation2 + $0xb8] sm:$0xff] %vm1369_vm10, %v1320_v37  ;;  %v1318_v29 = vpop.permute.xlu0 %1317 }
 0x22a   : > { %1392 = vst.msk [vmem:[#allocation2 + $0xb0] sm:$0xff] %vm1369_vm10, %v1318_v29 }
 0x22b   : > { %v2145_v30 = vpop.f32.mrb[0].mxu0 }
 0x22c   : > { %1928 = vst [vmem:[%s3641_s27 + $0x10] sm:$0xff] %v2145_v30  ;;  %v1691_v11 = vpop.f32.mrb[1].mxu0  ;;  %v1450_v12 = vpop.permute.xlu1 %1449  ;;  %v1858_v25 = vmul.f32 %v2145_v30, %v2145_v30 }
 0x22d   : > { %1926 = vst [vmem:[%s3641_s27] sm:$0xff] %v1691_v11  ;;  %1525 = vst.msk [vmem:[#allocation2 + $0xa8] sm:$0xff] %vm1503_vm11, %v1450_v12  ;;  %v1448_v50 = vpop.permute.xlu0 %1447  ;;  %v2146_v58 = vpop.f32.mrb[2].mxu0  ;;  %v1856_v10 = vmul.f32 %v1691_v11, %v1691_v11 }
 0x22e   : > { %1524 = vst.msk [vmem:[#allocation2 + $0xa0] sm:$0xff] %vm1503_vm11, %v1448_v50  ;;  %1929 = vst [vmem:[%s3641_s27 + $0x18] sm:$0xff] %v2146_v58  ;;  %v1694_v5 = vpop.f32.mrb[3].mxu0  ;;  %v1859_v18 = vmul.f32 %v2146_v58, %v2146_v58 }
 0x22f   : > { %v1818_v48 = vadd.f32 %v1694_v5, %v1691_v11  ;;  %v1857_v4 = vmul.f32 %v1694_v5, %v1694_v5  ;;  %1927 = vst [vmem:[%s3641_s27 + $0x8] sm:$0xff] %v1694_v5 }
 0x230   : > { %v1454_v27 = vpop.permute.xlu1 %1453 }
 0x231   : > { %v1819_v16 = vadd.f32 %v2145_v30, %v1818_v48  ;;  %v1888_v62 = vadd.f32 %v1857_v4, %v1856_v10  ;;  %1527 = vst.msk [vmem:[#allocation2 + $0xb8] sm:$0xff] %vm1503_vm11, %v1454_v27  ;;  %v1452_v63 = vpop.permute.xlu0 %1451 }
 0x232   : > { %1526 = vst.msk [vmem:[#allocation2 + $0xb0] sm:$0xff] %vm1503_vm11, %v1452_v63 }
 0x233   : > { %v1889_v42 = vadd.f32 %v1888_v62, %v1858_v25  ;;  %v1820_v19 = vadd.f32 %v2146_v58, %v1819_v16 }
 0x234   : > { %v789_v39 = vpop.permute.xlu1 %788  ;;  %v1557_v6 = vld [vmem:[#allocation2 + $0xa8] sm:$0xff] }
 0x235   : > { %860 = vst.msk [vmem:[#allocation2 + $0xc8] sm:$0xff] %vm834_vm6, %v789_v39  ;;  %v787_v23 = vpop.permute.xlu0 %786  ;;  %v1556_v24 = vld [vmem:[#allocation2 + $0xa0] sm:$0xff]  ;;  %v1890_v51 = vadd.f32 %v1889_v42, %v1859_v18 }
 0x236   : > { %859 = vst.msk [vmem:[#allocation2 + $0xc0] sm:$0xff] %vm834_vm6, %v787_v23  ;;  %v1578_v28 = vpack.c.bf16 %v1557_v6, %v1556_v24 }
 0x238   : > { %2163 = vmatprep.mubr.msk.bf16.mxu1 %vm1604_vm12, %v1578_v28  ;;  %v793_v31 = vpop.permute.xlu1 %792  ;;  %v1559_v32 = vld [vmem:[#allocation2 + $0xb8] sm:$0xff] }
 0x239   : > { %862 = vst.msk [vmem:[#allocation2 + $0xd8] sm:$0xff] %vm834_vm6, %v793_v31  ;;  %v791_v43 = vpop.permute.xlu0 %790  ;;  %v1558_v7 = vld [vmem:[#allocation2 + $0xb0] sm:$0xff] }
 0x23a   : > { %861 = vst.msk [vmem:[#allocation2 + $0xd0] sm:$0xff] %vm834_vm6, %v791_v43  ;;  %v1579_v33 = vpack.c.bf16 %v1559_v32, %v1558_v7 }
 0x23c   : > { %2164 = vmatmul.mubr.msk.bf16.gmra.mrb[4].mxu1 %vm1604_vm12, %v1579_v33  ;;  %v924_v9 = vpop.permute.xlu1 %923 }
 0x23d   : > { %995 = vst.msk [vmem:[#allocation2 + $0xc8] sm:$0xff] %vm969_vm7, %v924_v9  ;;  %v922_v55 = vpop.permute.xlu0 %921 }
 0x23e   : > { %994 = vst.msk [vmem:[#allocation2 + $0xc0] sm:$0xff] %vm969_vm7, %v922_v55 }
 0x240   : > { %v928_v45 = vpop.permute.xlu1 %927 }
 0x241   : > { %997 = vst.msk [vmem:[#allocation2 + $0xd8] sm:$0xff] %vm969_vm7, %v928_v45  ;;  %v926_v38 = vpop.permute.xlu0 %925 }
 0x242   : > { %996 = vst.msk [vmem:[#allocation2 + $0xd0] sm:$0xff] %vm969_vm7, %v926_v38 }
 0x244   : > { %v1058_v3 = vpop.permute.xlu1 %1057 }
 0x245   : > { %1129 = vst.msk [vmem:[#allocation2 + $0xc8] sm:$0xff] %vm1103_vm8, %v1058_v3  ;;  %v1056_v53 = vpop.permute.xlu0 %1055 }
 0x246   : > { %1128 = vst.msk [vmem:[#allocation2 + $0xc0] sm:$0xff] %vm1103_vm8, %v1056_v53 }
 0x248   : > { %v1062_v17 = vpop.permute.xlu1 %1061 }
 0x249   : > { %1131 = vst.msk [vmem:[#allocation2 + $0xd8] sm:$0xff] %vm1103_vm8, %v1062_v17  ;;  %v1060_v8 = vpop.permute.xlu0 %1059 }
 0x24a   : > { %1130 = vst.msk [vmem:[#allocation2 + $0xd0] sm:$0xff] %vm1103_vm8, %v1060_v8 }
 0x24c   : > { %v1189_v56 = vpop.permute.xlu1 %1188 }
 0x24d   : > { %1260 = vst.msk [vmem:[#allocation2 + $0xc8] sm:$0xff] %vm1234_vm9, %v1189_v56  ;;  %v1187_v60 = vpop.permute.xlu0 %1186 }
 0x24e   : > { %1259 = vst.msk [vmem:[#allocation2 + $0xc0] sm:$0xff] %vm1234_vm9, %v1187_v60 }
 0x250   : > { %v1193_v36 = vpop.permute.xlu1 %1192 }
 0x251   : > { %1262 = vst.msk [vmem:[#allocation2 + $0xd8] sm:$0xff] %vm1234_vm9, %v1193_v36  ;;  %v1191_v44 = vpop.permute.xlu0 %1190 }
 0x252   : > { %1261 = vst.msk [vmem:[#allocation2 + $0xd0] sm:$0xff] %vm1234_vm9, %v1191_v44 }
 0x253   : > { %v2149_v61 = vpop.f32.mrb[4].mxu0 }
 0x254   : > { %1932 = vst [vmem:[%s3641_s27 + $0x30] sm:$0xff] %v2149_v61  ;;  %v1707_v22 = vpop.f32.mrb[5].mxu0  ;;  %v1324_v59 = vpop.permute.xlu1 %1323  ;;  %v1862_v34 = vmul.f32 %v2149_v61, %v2149_v61 }
 0x255   : > { %v1821_v0 = vadd.f32 %v1820_v19, %v1707_v22  ;;  %v1860_v13 = vmul.f32 %v1707_v22, %v1707_v22  ;;  %1930 = vst [vmem:[%s3641_s27 + $0x20] sm:$0xff] %v1707_v22  ;;  %1395 = vst.msk [vmem:[#allocation2 + $0xc8] sm:$0xff] %vm1369_vm10, %v1324_v59  ;;  %v1322_v20 = vpop.permute.xlu0 %1321  ;;  %v2150_v49 = vpop.f32.mrb[6].mxu0 }
 0x256   : > { %1394 = vst.msk [vmem:[#allocation2 + $0xc0] sm:$0xff] %vm1369_vm10, %v1322_v20  ;;  %1933 = vst [vmem:[%s3641_s27 + $0x38] sm:$0xff] %v2150_v49  ;;  %v1710_v15 = vpop.f32.mrb[7].mxu0  ;;  %v1863_v14 = vmul.f32 %v2150_v49, %v2150_v49 }
 0x257   : > { %v1891_v40 = vadd.f32 %v1890_v51, %v1860_v13  ;;  %v1822_v21 = vadd.f32 %v1821_v0, %v1710_v15  ;;  %v1861_v1 = vmul.f32 %v1710_v15, %v1710_v15  ;;  %1931 = vst [vmem:[%s3641_s27 + $0x28] sm:$0xff] %v1710_v15 }
 0x258   : > { %v1328_v41 = vpop.permute.xlu1 %1327 }
 0x259   : > { %v1823_v26 = vadd.f32 %v2149_v61, %v1822_v21  ;;  %v1892_v35 = vadd.f32 %v1891_v40, %v1861_v1  ;;  %1397 = vst.msk [vmem:[#allocation2 + $0xd8] sm:$0xff] %vm1369_vm10, %v1328_v41  ;;  %v1326_v52 = vpop.permute.xlu0 %1325 }
 0x25a   : > { %1396 = vst.msk [vmem:[#allocation2 + $0xd0] sm:$0xff] %vm1369_vm10, %v1326_v52 }
 0x25b   : > { %v1893_v57 = vadd.f32 %v1892_v35, %v1862_v34  ;;  %v1824_v54 = vadd.f32 %v2150_v49, %v1823_v26 }
 0x25c   : > { %v1458_v46 = vpop.permute.xlu1 %1457 }
 0x25d   : > { %1529 = vst.msk [vmem:[#allocation2 + $0xc8] sm:$0xff] %vm1503_vm11, %v1458_v46  ;;  %v1456_v2 = vpop.permute.xlu0 %1455  ;;  %v1894_v47 = vadd.f32 %v1893_v57, %v1863_v14 }
 0x25e   : > { %1528 = vst.msk [vmem:[#allocation2 + $0xc0] sm:$0xff] %vm1503_vm11, %v1456_v2 }
 0x260   : > { %v1462_v37 = vpop.permute.xlu1 %1461 }
 0x261   : > { %1531 = vst.msk [vmem:[#allocation2 + $0xd8] sm:$0xff] %vm1503_vm11, %v1462_v37  ;;  %v1460_v29 = vpop.permute.xlu0 %1459 }
 0x262   : > { %1530 = vst.msk [vmem:[#allocation2 + $0xd0] sm:$0xff] %vm1503_vm11, %v1460_v29 }
 0x264   : > { %v797_v30 = vpop.permute.xlu1 %796  ;;  %v1561_v11 = vld [vmem:[#allocation2 + $0xc8] sm:$0xff] }
 0x265   : > { %864 = vst.msk [vmem:[#allocation2 + $0xe8] sm:$0xff] %vm834_vm6, %v797_v30  ;;  %v795_v12 = vpop.permute.xlu0 %794  ;;  %v1560_v50 = vld [vmem:[#allocation2 + $0xc0] sm:$0xff] }
 0x266   : > { %863 = vst.msk [vmem:[#allocation2 + $0xe0] sm:$0xff] %vm834_vm6, %v795_v12  ;;  %v1580_v58 = vpack.c.bf16 %v1561_v11, %v1560_v50 }
 0x268   : > { %2167 = vmatprep.mubr.msk.bf16.mxu1 %vm1604_vm12, %v1580_v58  ;;  %v801_v5 = vpop.permute.xlu1 %800  ;;  %v1563_v10 = vld [vmem:[#allocation2 + $0xd8] sm:$0xff] }
 0x269   : > { %866 = vst.msk [vmem:[#allocation2 + $0xf8] sm:$0xff] %vm834_vm6, %v801_v5  ;;  %v799_v48 = vpop.permute.xlu0 %798  ;;  %v1562_v4 = vld [vmem:[#allocation2 + $0xd0] sm:$0xff] }
 0x26a   : > { %865 = vst.msk [vmem:[#allocation2 + $0xf0] sm:$0xff] %vm834_vm6, %v799_v48  ;;  %v1581_v27 = vpack.c.bf16 %v1563_v10, %v1562_v4 }
 0x26c   : > { %2168 = vmatmul.mubr.msk.bf16.gmra.mrb[8].mxu1 %vm1604_vm12, %v1581_v27  ;;  %v932_v25 = vpop.permute.xlu1 %931 }
 0x26d   : > { %999 = vst.msk [vmem:[#allocation2 + $0xe8] sm:$0xff] %vm969_vm7, %v932_v25  ;;  %v930_v16 = vpop.permute.xlu0 %929 }
 0x26e   : > { %998 = vst.msk [vmem:[#allocation2 + $0xe0] sm:$0xff] %vm969_vm7, %v930_v16 }
 0x270   : > { %v936_v62 = vpop.permute.xlu1 %935 }
 0x271   : > { %1001 = vst.msk [vmem:[#allocation2 + $0xf8] sm:$0xff] %vm969_vm7, %v936_v62  ;;  %v934_v63 = vpop.permute.xlu0 %933 }
 0x272   : > { %1000 = vst.msk [vmem:[#allocation2 + $0xf0] sm:$0xff] %vm969_vm7, %v934_v63 }
 0x274   : > { %v1066_v18 = vpop.permute.xlu1 %1065 }
 0x275   : > { %1133 = vst.msk [vmem:[#allocation2 + $0xe8] sm:$0xff] %vm1103_vm8, %v1066_v18  ;;  %v1064_v42 = vpop.permute.xlu0 %1063 }
 0x276   : > { %1132 = vst.msk [vmem:[#allocation2 + $0xe0] sm:$0xff] %vm1103_vm8, %v1064_v42 }
 0x278   : > { %v1070_v19 = vpop.permute.xlu1 %1069 }
 0x279   : > { %1135 = vst.msk [vmem:[#allocation2 + $0xf8] sm:$0xff] %vm1103_vm8, %v1070_v19  ;;  %v1068_v39 = vpop.permute.xlu0 %1067 }
 0x27a   : > { %1134 = vst.msk [vmem:[#allocation2 + $0xf0] sm:$0xff] %vm1103_vm8, %v1068_v39 }
 0x27c   : > { %v1197_v6 = vpop.permute.xlu1 %1196 }
 0x27d   : > { %1264 = vst.msk [vmem:[#allocation2 + $0xe8] sm:$0xff] %vm1234_vm9, %v1197_v6  ;;  %v1195_v23 = vpop.permute.xlu0 %1194 }
 0x27e   : > { %1263 = vst.msk [vmem:[#allocation2 + $0xe0] sm:$0xff] %vm1234_vm9, %v1195_v23 }
 0x27f   : > { %v2153_v24 = vpop.f32.mrb[8].mxu0 }
 0x280   : > { %1936 = vst [vmem:[%s3641_s27 + $0x50] sm:$0xff] %v2153_v24  ;;  %v1723_v51 = vpop.f32.mrb[9].mxu0  ;;  %v1201_v28 = vpop.permute.xlu1 %1200  ;;  %v1866_v3 = vmul.f32 %v2153_v24, %v2153_v24 }
 0x281   : > { %v1825_v31 = vadd.f32 %v1824_v54, %v1723_v51  ;;  %v1864_v32 = vmul.f32 %v1723_v51, %v1723_v51  ;;  %1934 = vst [vmem:[%s3641_s27 + $0x40] sm:$0xff] %v1723_v51  ;;  %1266 = vst.msk [vmem:[#allocation2 + $0xf8] sm:$0xff] %vm1234_vm9, %v1201_v28  ;;  %v1199_v43 = vpop.permute.xlu0 %1198  ;;  %v2154_v7 = vpop.f32.mrb[10].mxu0 }
 0x282   : > { %1265 = vst.msk [vmem:[#allocation2 + $0xf0] sm:$0xff] %vm1234_vm9, %v1199_v43  ;;  %1937 = vst [vmem:[%s3641_s27 + $0x58] sm:$0xff] %v2154_v7  ;;  %v1726_v33 = vpop.f32.mrb[11].mxu0  ;;  %v1867_v56 = vmul.f32 %v2154_v7, %v2154_v7 }
 0x283   : > { %v1895_v9 = vadd.f32 %v1894_v47, %v1864_v32  ;;  %v1826_v55 = vadd.f32 %v1825_v31, %v1726_v33  ;;  %v1865_v45 = vmul.f32 %v1726_v33, %v1726_v33  ;;  %1935 = vst [vmem:[%s3641_s27 + $0x48] sm:$0xff] %v1726_v33 }
 0x284   : > { %v1332_v38 = vpop.permute.xlu1 %1331 }
 0x285   : > { %v1827_v53 = vadd.f32 %v2153_v24, %v1826_v55  ;;  %v1896_v17 = vadd.f32 %v1895_v9, %v1865_v45  ;;  %1399 = vst.msk [vmem:[#allocation2 + $0xe8] sm:$0xff] %vm1369_vm10, %v1332_v38  ;;  %v1330_v8 = vpop.permute.xlu0 %1329 }
 0x286   : > { %1398 = vst.msk [vmem:[#allocation2 + $0xe0] sm:$0xff] %vm1369_vm10, %v1330_v8 }
 0x287   : > { %v1897_v60 = vadd.f32 %v1896_v17, %v1866_v3  ;;  %v1828_v36 = vadd.f32 %v2154_v7, %v1827_v53 }
 0x288   : > { %v1336_v44 = vpop.permute.xlu1 %1335 }
 0x289   : > { %1401 = vst.msk [vmem:[#allocation2 + $0xf8] sm:$0xff] %vm1369_vm10, %v1336_v44  ;;  %v1334_v61 = vpop.permute.xlu0 %1333  ;;  %v1898_v22 = vadd.f32 %v1897_v60, %v1867_v56 }
 0x28a   : > { %1400 = vst.msk [vmem:[#allocation2 + $0xf0] sm:$0xff] %vm1369_vm10, %v1334_v61 }
 0x28c   : > { %v1466_v59 = vpop.permute.xlu1 %1465 }
 0x28d   : > { %1533 = vst.msk [vmem:[#allocation2 + $0xe8] sm:$0xff] %vm1503_vm11, %v1466_v59  ;;  %v1464_v0 = vpop.permute.xlu0 %1463 }
 0x28e   : > { %1532 = vst.msk [vmem:[#allocation2 + $0xe0] sm:$0xff] %vm1503_vm11, %v1464_v0 }
 0x290   : > { %v1470_v13 = vpop.permute.xlu1 %1469 }
 0x291   : > { %1535 = vst.msk [vmem:[#allocation2 + $0xf8] sm:$0xff] %vm1503_vm11, %v1470_v13  ;;  %v1468_v20 = vpop.permute.xlu0 %1467 }
 0x292   : > { %1534 = vst.msk [vmem:[#allocation2 + $0xf0] sm:$0xff] %vm1503_vm11, %v1468_v20 }
 0x294   : > { %v1565_v49 = vld [vmem:[#allocation2 + $0xe8] sm:$0xff] }
 0x295   : > { %v1564_v15 = vld [vmem:[#allocation2 + $0xe0] sm:$0xff] }
 0x296   : > { %v1582_v40 = vpack.c.bf16 %v1565_v49, %v1564_v15 }
 0x298   : > { %2171 = vmatprep.mubr.msk.bf16.mxu1 %vm1604_vm12, %v1582_v40  ;;  %v1567_v21 = vld [vmem:[#allocation2 + $0xf8] sm:$0xff] }
 0x299   : > { %v1566_v1 = vld [vmem:[#allocation2 + $0xf0] sm:$0xff] }
 0x29a   : > { %v1583_v41 = vpack.c.bf16 %v1567_v21, %v1566_v1 }
 0x29c   : > { %2172 = vmatmul.mubr.msk.bf16.gmra.mrb[12].mxu1 %vm1604_vm12, %v1583_v41 }
 0x2af   : > { %v2157_v34 = vpop.f32.mrb[12].mxu0 }
 0x2b0   : > { %1940 = vst [vmem:[%s3641_s27 + $0x70] sm:$0xff] %v2157_v34  ;;  %v1739_v26 = vpop.f32.mrb[13].mxu0  ;;  %v1870_v47 = vmul.f32 %v2157_v34, %v2157_v34 }
 0x2b1   : > { %v1829_v35 = vadd.f32 %v1828_v36, %v1739_v26  ;;  %v1868_v52 = vmul.f32 %v1739_v26, %v1739_v26  ;;  %1938 = vst [vmem:[%s3641_s27 + $0x60] sm:$0xff] %v1739_v26  ;;  %v2158_v14 = vpop.f32.mrb[14].mxu0 }
 0x2b2   : > { %1941 = vst [vmem:[%s3641_s27 + $0x78] sm:$0xff] %v2158_v14  ;;  %v1742_v57 = vpop.f32.mrb[15].mxu0  ;;  %v1871_v30 = vmul.f32 %v2158_v14, %v2158_v14 }
 0x2b3   : > { %v1899_v54 = vadd.f32 %v1898_v22, %v1868_v52  ;;  %v1830_v46 = vadd.f32 %v1829_v35, %v1742_v57  ;;  %v1869_v2 = vmul.f32 %v1742_v57, %v1742_v57  ;;  %1939 = vst [vmem:[%s3641_s27 + $0x68] sm:$0xff] %v1742_v57 }
 0x2b5   : > { %v1831_v37 = vadd.f32 %v2157_v34, %v1830_v46  ;;  %v1900_v29 = vadd.f32 %v1899_v54, %v1869_v2 }
 0x2b7   : > { %v1901_v11 = vadd.f32 %v1900_v29, %v1870_v47  ;;  %v1832_v12 = vadd.f32 %v2158_v14, %v1831_v37 }
 0x2b9   : > { %v1902_v50 = vadd.f32 %v1901_v11, %v1871_v30 }
 0x2df   : > { %v2161_v58 = vpop.f32.mrb[0].mxu1 }
 0x2e0   : > { %1944 = vst [vmem:[%s3641_s27 + $0x90] sm:$0xff] %v2161_v58  ;;  %v1755_v5 = vpop.f32.mrb[1].mxu1  ;;  %v1874_v63 = vmul.f32 %v2161_v58, %v2161_v58 }
 0x2e1   : > { %v1833_v10 = vadd.f32 %v1832_v12, %v1755_v5  ;;  %v1872_v48 = vmul.f32 %v1755_v5, %v1755_v5  ;;  %1942 = vst [vmem:[%s3641_s27 + $0x80] sm:$0xff] %v1755_v5  ;;  %v2162_v4 = vpop.f32.mrb[2].mxu1 }
 0x2e2   : > { %1945 = vst [vmem:[%s3641_s27 + $0x98] sm:$0xff] %v2162_v4  ;;  %v1758_v27 = vpop.f32.mrb[3].mxu1  ;;  %v1875_v19 = vmul.f32 %v2162_v4, %v2162_v4 }
 0x2e3   : > { %v1903_v25 = vadd.f32 %v1902_v50, %v1872_v48  ;;  %v1834_v16 = vadd.f32 %v1833_v10, %v1758_v27  ;;  %v1873_v62 = vmul.f32 %v1758_v27, %v1758_v27  ;;  %1943 = vst [vmem:[%s3641_s27 + $0x88] sm:$0xff] %v1758_v27 }
 0x2e5   : > { %v1835_v18 = vadd.f32 %v2161_v58, %v1834_v16  ;;  %v1904_v42 = vadd.f32 %v1903_v25, %v1873_v62 }
 0x2e7   : > { %v1905_v39 = vadd.f32 %v1904_v42, %v1874_v63  ;;  %v1836_v6 = vadd.f32 %v2162_v4, %v1835_v18 }
 0x2e9   : > { %v1906_v23 = vadd.f32 %v1905_v39, %v1875_v19 }
 0x30f   : > { %v2165_v24 = vpop.f32.mrb[4].mxu1 }
 0x310   : > { %1948 = vst [vmem:[%s3641_s27 + $0xb0] sm:$0xff] %v2165_v24  ;;  %v1771_v51 = vpop.f32.mrb[5].mxu1  ;;  %v1878_v55 = vmul.f32 %v2165_v24, %v2165_v24 }
 0x311   : > { %v1837_v28 = vadd.f32 %v1836_v6, %v1771_v51  ;;  %v1876_v31 = vmul.f32 %v1771_v51, %v1771_v51  ;;  %1946 = vst [vmem:[%s3641_s27 + $0xa0] sm:$0xff] %v1771_v51  ;;  %v2166_v32 = vpop.f32.mrb[6].mxu1 }
 0x312   : > { %1949 = vst [vmem:[%s3641_s27 + $0xb8] sm:$0xff] %v2166_v32  ;;  %v1774_v43 = vpop.f32.mrb[7].mxu1  ;;  %v1879_v3 = vmul.f32 %v2166_v32, %v2166_v32 }
 0x313   : > { %v1907_v7 = vadd.f32 %v1906_v23, %v1876_v31  ;;  %v1838_v33 = vadd.f32 %v1837_v28, %v1774_v43  ;;  %v1877_v9 = vmul.f32 %v1774_v43, %v1774_v43  ;;  %1947 = vst [vmem:[%s3641_s27 + $0xa8] sm:$0xff] %v1774_v43 }
 0x315   : > { %v1839_v45 = vadd.f32 %v2165_v24, %v1838_v33  ;;  %v1908_v38 = vadd.f32 %v1907_v7, %v1877_v9 }
 0x317   : > { %v1909_v53 = vadd.f32 %v1908_v38, %v1878_v55  ;;  %v1840_v17 = vadd.f32 %v2166_v32, %v1839_v45 }
 0x319   : > { %v1910_v8 = vadd.f32 %v1909_v53, %v1879_v3 }
 0x33f   : > { %v2169_v56 = vpop.f32.mrb[8].mxu1 }
 0x340   : > { %1952 = vst [vmem:[%s3641_s27 + $0xd0] sm:$0xff] %v2169_v56  ;;  %v1787_v60 = vpop.f32.mrb[9].mxu1  ;;  %v1882_v20 = vmul.f32 %v2169_v56, %v2169_v56 }
 0x341   : > { %v1841_v36 = vadd.f32 %v1840_v17, %v1787_v60  ;;  %v1880_v44 = vmul.f32 %v1787_v60, %v1787_v60  ;;  %1950 = vst [vmem:[%s3641_s27 + $0xc0] sm:$0xff] %v1787_v60  ;;  %v2170_v61 = vpop.f32.mrb[10].mxu1 }
 0x342   : > { %1953 = vst [vmem:[%s3641_s27 + $0xd8] sm:$0xff] %v2170_v61  ;;  %v1790_v22 = vpop.f32.mrb[11].mxu1  ;;  %v1883_v40 = vmul.f32 %v2170_v61, %v2170_v61 }
 0x343   : > { %v1911_v59 = vadd.f32 %v1910_v8, %v1880_v44  ;;  %v1842_v0 = vadd.f32 %v1841_v36, %v1790_v22  ;;  %v1881_v13 = vmul.f32 %v1790_v22, %v1790_v22  ;;  %1951 = vst [vmem:[%s3641_s27 + $0xc8] sm:$0xff] %v1790_v22 }
 0x345   : > { %v1843_v49 = vadd.f32 %v2169_v56, %v1842_v0  ;;  %v1912_v15 = vadd.f32 %v1911_v59, %v1881_v13 }
 0x347   : > { %v1913_v21 = vadd.f32 %v1912_v15, %v1882_v20  ;;  %v1844_v1 = vadd.f32 %v2170_v61, %v1843_v49 }
 0x349   : > { %v1914_v41 = vadd.f32 %v1913_v21, %v1883_v40 }
 0x36f   : > { %v2173_v34 = vpop.f32.mrb[12].mxu1 }
 0x370   : > { %1956 = vst [vmem:[%s3641_s27 + $0xf0] sm:$0xff] %v2173_v34  ;;  %v1803_v26 = vpop.f32.mrb[13].mxu1 }
 0x371   : > { %v1845_v35 = vadd.f32 %v1844_v1, %v1803_v26  ;;  %v1884_v52 = vmul.f32 %v1803_v26, %v1803_v26  ;;  %1954 = vst [vmem:[%s3641_s27 + $0xe0] sm:$0xff] %v1803_v26  ;;  %v2174_v14 = vpop.f32.mrb[14].mxu1 }
 0x372   : > { %1957 = vst [vmem:[%s3641_s27 + $0xf8] sm:$0xff] %v2174_v14  ;;  %v1806_v57 = vpop.f32.mrb[15].mxu1 }
 0x373   : > { %v1915_v54 = vadd.f32 %v1914_v41, %v1884_v52  ;;  %v1846_v46 = vadd.f32 %v1845_v35, %v1806_v57  ;;  %v1885_v2 = vmul.f32 %v1806_v57, %v1806_v57  ;;  %1955 = vst [vmem:[%s3641_s27 + $0xe8] sm:$0xff] %v1806_v57 }
 0x374   : > { %2253 = shalt.err (!%p2250_p3)
}
 0x375   : > { %s2254_s17 = scalar_lea.hbm %s3735_s6, 4096  ;;  %s2258_s24 = scalar_lea.hbm %s3817_s2, 8192 }
 0x376   : > { %p2255_p4 = scmp.ne.s32.totalorder %s3735_s6, %s2254_s17  ;;  %p2259_p9 = scmp.lt.u32.totalorder %s3735_s6, %s3817_s2 }
 0x377   : > { %p2260_p10 = scmp.lt.u32.totalorder %s2258_s24, %s2254_s17  ;;  %p2262_p12 = scmp.lt.u32.totalorder %s2254_s17, %s3735_s6 }
 0x378   : > { %p2256_p7 = pnand %p2255_p4, %p2405_p5 }
 0x379   : > { %p2261_p11 = por %p2260_p10, %p2259_p9 }
 0x37a   : > { %p2257_p8 = pneg %p2256_p7 }
 0x37b   : > { %p2263_p13 = por %p2262_p12, %p2261_p11 }
 0x37d   : > { %p2264_p0 = pnand %p2263_p13, %p2257_p8 }
 0x37f   : > { %2267 = shalt.err (!%p2264_p0)
}
 0x380   : > { %s2345_s28 = smov 128   ;;  %v1886_v47 = vmul.f32 %v2173_v34, %v2173_v34  ;;  %v1847_v37 = vadd.f32 %v2173_v34, %v1846_v46  ;;  %v1916_v29 = vadd.f32 %v1915_v54, %v1885_v2  ;;  %v1887_v30 = vmul.f32 %v2174_v14, %v2174_v14  ;;  %s2089_s4 = sshll.u32 %s3634_s25, 1 }
 0x381   : > { %2184 = dma.vmem_to_hbm [thread:$0]  (%p2405_p5), %s3738_s29, 4096, %s3735_s6, %s1959_s7, %s2345_s28, %s2345_s28, %s2337_s30  }
 0x382   : > { %v1848_v11 = vadd.f32 %v2174_v14, %v1847_v37  ;;  %v1917_v12 = vadd.f32 %v1916_v29, %v1886_v47  ;;  %s2114_s30 = sshll.u32 %s2388_s16, 5  ;;  %s174_s29 = scalar_lea.vmem [#allocation5], %s2089_s4 }
 0x383   : > { %s1993_s5 = sshll.u32 %s174_s29, 4  ;;  %s3772_s8 = scalar_lea.hbm %s3818_s3, %s2114_s30  ;;  %s3774_s5 = int_to_ptr.vmem [resolvable:$true] %s1993_s5 }
 0x384   : > { %v1849_v50 = vrot.slane %v1848_v11, 4  ;;  %v1918_v58 = vadd.f32 %v1917_v12, %v1887_v30  ;;  %s1964_s9 = scalar_lea.sflag [#allocation6], %s3634_s25  ;;  %s2268_s10 = scalar_lea.vmem %s3774_s5, 32 }
 0x385   : > { %p2269_p1 = scmp.ne.s32.totalorder %s3774_s5, %s2268_s10  ;;  %s2346_s16 = smov [#allocation5]  }
 0x386   : > { %v1850_v5 = vadd.f32 %v1849_v50, %v1848_v11  ;;  %v1919_v10 = vrot.slane %v1918_v58, 4  ;;  %s2272_s11 = sshll.u32 %s2346_s16, 4  ;;  %s2273_s11 = int_to_ptr.vmem [resolvable:$false] %s2272_s11 }
 0x387   : > { %p2270_p2 = pnand %p2269_p1, %p2405_p5  ;;  %s2274_s17 = scalar_lea.vmem %s2273_s11, 64 }
 0x388   : > { %v1851_v48 = vrot.slane %v1850_v5, 2  ;;  %v1920_v4 = vadd.f32 %v1919_v10, %v1918_v58  ;;  %p2275_p4 = scmp.lt.s32.totalorder %s3774_s5, %s2273_s11  ;;  %p2276_p7 = scmp.lt.s32.totalorder %s2274_s17, %s2268_s10 }
 0x389   : > { %p2271_p3 = pneg %p2270_p2 }
 0x38a   : > { %v1852_v27 = vadd.f32 %v1851_v48, %v1850_v5  ;;  %v1921_v25 = vrot.slane %v1920_v4, 2  ;;  %p2277_p8 = por %p2276_p7, %p2275_p4 }
 0x38c   : > { %v1853_v16 = vrot.slane %v1852_v27, 1  ;;  %v1922_v62 = vadd.f32 %v1921_v25, %v1920_v4  ;;  %p2278_p9 = pnand %p2277_p8, %p2271_p3 }
 0x38e   : > { %v1854_v63 = vadd.f32 %v1853_v16, %v1852_v27  ;;  %v1923_v18 = vrot.slane %v1922_v62, 1 }
 0x390   : > { %1855 = vst [vmem:[%s174_s29] sm:$0x1] %v1854_v63  ;;  %v1924_v42 = vadd.f32 %v1923_v18, %v1922_v62 }
 0x392   : > { %1925 = vst [vmem:[%s174_s29 + $0x1] sm:$0x1] %v1924_v42 }
 0x393   : > { %2281 = shalt.err (!%p2278_p9)
}
 0x394   : > { %s2282_s25 = scalar_lea.hbm %s3772_s8, 32  ;;  %s2286_s24 = scalar_lea.hbm %s3818_s3, 64 }
 0x395   : > { %p2283_p10 = scmp.ne.s32.totalorder %s3772_s8, %s2282_s25  ;;  %p2287_p13 = scmp.lt.u32.totalorder %s3772_s8, %s3818_s3 }
 0x396   : > { %p2288_p0 = scmp.lt.u32.totalorder %s2286_s24, %s2282_s25  ;;  %p2290_p2 = scmp.lt.u32.totalorder %s2282_s25, %s3772_s8 }
 0x397   : > { %p2284_p11 = pnand %p2283_p10, %p2405_p5 }
 0x398   : > { %p2289_p1 = por %p2288_p0, %p2287_p13 }
 0x399   : > { %p2285_p12 = pneg %p2284_p11 }
 0x39a   : > { %p2291_p3 = por %p2290_p2, %p2289_p1 }
 0x39c   : > { %p2292_p4 = pnand %p2291_p3, %p2285_p12 }
 0x39e   : > { %2295 = shalt.err (!%p2292_p4)
}
 0x39f   : > { %2185 = dma.vmem_to_hbm [thread:$0]  (%p2405_p5), %s3774_s5, 32, %s3772_s8, %s1964_s9  }
 0x3a0 PF: > { %p2195_p7 = scmp.ge.s32.totalorder %s2334_s15, 2  ;;  %s2005_s28 = sand.u32 1, %s2322_s12  }
 0x3a1   : > { %s2006_s4 = scalar_lea.sflag [#allocation4], %s2005_s28 }
 0x3a2   : > { %p2189_p8 = pnand %p2195_p7, %p2409_p6 }
 0x3a4   : > { %2313 = dma.done.wait (!%p2189_p8), %s2006_s4, 4096  }
 0x3a5   : > { %2315 = vsyncadd (!%p2189_p8), %s2006_s4, 4294963200  ;;  %s2015_s30 = scalar_lea.sflag [#allocation6], %s2005_s28 }
 0x3a6   : > { %2317 = dma.done.wait (!%p2189_p8), %s2015_s30, 32  }
 0x3a7   : > { %2319 = vsyncadd (!%p2189_p8), %s2015_s30, 4294967264  ;;  %p17_p5 = scmp.ge.s32.totalorder %s2392_s18, 4   ;;  %s3953_s12 = smov %s2326_s13 }
 0x3a8   : > { %s3954_s13 = smov %s2330_s14  ;;  %s3955_s14 = smov %s2403_s21 }
 0x3a9   : > { %s3956_s15 = smov %s2392_s18  ;;  %19 = sbr.rel (!%p17_p5) target bundleno = 5 (0x5), region = 80 }
 0x3b0   :  { %2020 = vsyncpa [#allocation4], 1 }
 0x3b1   :  { %2022 = vsyncpa [#allocation4 + $0x1], 1 }
 0x3b2   :  { %2023 = vsyncpa [#allocation6], 1 }
 0x3b3   :  { %2025 = vsyncpa [#allocation6 + $0x1], 1 }

</bundles_post_ra>
